<compile_context>
chip_gen: v6e
topology: v6e:2x2x1
jax: 0.10.0
libtpu: 0.0.40
codegen_flags: <defaults>
</compile_context>

<pallas_src>
import math

import jax
import jax.numpy as jnp
from jax.experimental import pallas as pl
from jax.experimental.pallas import tpu as pltpu

NUM_HEADS = 4
LN_EPS = 1e-5  # PyTorch nn.LayerNorm default eps

# 'qd,kd->qk' : contract the last dim of both operands (transposed-RHS matmul).
_TRANS_B_DIMS = (((1,), (1,)), ((), ()))


def _attention_block_kernel(x_ref, gamma_ref, beta_ref,
                            wq_ref, bq_ref, wk_ref, bk_ref, wv_ref, bv_ref,
                            wout_ref, bout_ref, out_ref):
    C, S = x_ref.shape
    D = C // NUM_HEADS

    # ---- NCHW tile -> token-major: small in-VMEM 2-D transpose (XLU) ----
    x = jnp.transpose(x_ref[...])                        # (S, C) f32

    # ---- LayerNorm over channels, one-pass statistics (f32 elementwise) ----
    s1 = jnp.sum(x, axis=-1, keepdims=True)
    s2 = jnp.sum(x * x, axis=-1, keepdims=True)
    mean = s1 * (1.0 / C)
    var = s2 * (1.0 / C) - mean * mean
    rstd = jax.lax.rsqrt(var + LN_EPS)
    xn = ((x - mean) * rstd * gamma_ref[0] + beta_ref[0]).astype(jnp.bfloat16)

    # ---- per-head attention; all matmuls are plain 2-D (MXU), no slicing ----
    y = jnp.zeros((S, C), jnp.float32)
    for h in range(NUM_HEADS):                            # static, NUM_HEADS small
        # Per-head projections straight from stacked weights: no lane slicing
        # of activations.  1/sqrt(D) is pre-folded into wq/bq in the wrapper.
        qh = (jnp.dot(xn, wq_ref[h], preferred_element_type=jnp.float32)
              + bq_ref[h]).astype(jnp.bfloat16)           # (S, D)
        kh = (jnp.dot(xn, wk_ref[h], preferred_element_type=jnp.float32)
              + bk_ref[h]).astype(jnp.bfloat16)
        vh = (jnp.dot(xn, wv_ref[h], preferred_element_type=jnp.float32)
              + bv_ref[h]).astype(jnp.bfloat16)

        s = jax.lax.dot_general(qh, kh, _TRANS_B_DIMS,
                                preferred_element_type=jnp.float32)   # (S, S) f32
        s = s - jnp.max(s, axis=-1, keepdims=True)
        p = jnp.exp(s)
        denom = jnp.sum(p, axis=-1, keepdims=True)
        head = jnp.dot(p.astype(jnp.bfloat16), vh,
                       preferred_element_type=jnp.float32)            # (S, D) f32
        # normalize after PV (D lanes instead of S); reciprocal on the EUP
        head = head * pl.reciprocal(denom, approx=True)

        # Fused (out_proj @ proj) row-block for this head, accumulated in f32:
        # replaces concat / masked scratch stores + two chained output matmuls.
        y = y + jnp.dot(head.astype(jnp.bfloat16), wout_ref[h],
                        preferred_element_type=jnp.float32)           # (S, C)

    y = y + bout_ref[0]
    # token-major -> NCHW tile so the wrapper epilogue is a pure reshape
    out_ref[...] = jnp.transpose(y).astype(out_ref.dtype)             # (C, S)


def attention_block_pallas(x_nchw, params):
    B, C, Hsp, Wsp = x_nchw.shape
    S = Hsp * Wsp
    nh = NUM_HEADS
    D = C // nh

    x_bcs = x_nchw.reshape(B, C, S)          # metadata reshape only, no HBM pass

    # --- wrapper-side weight prep (tiny): pre-transpose (PyTorch y = x @ W.T),
    # split per head, fold 1/sqrt(D) into q, fuse out_proj with final proj. ---
    scale = 1.0 / math.sqrt(D)

    def head_cols(w_t):                       # (C, C) columns -> (H, C, D)
        return jnp.transpose(w_t.reshape(C, nh, D), (1, 0, 2))

    wq_s = head_cols(params["wq"].T * scale).astype(jnp.bfloat16)
    wk_s = head_cols(params["wk"].T).astype(jnp.bfloat16)
    wv_s = head_cols(params["wv"].T).astype(jnp.bfloat16)
    bq_s = (params["bq"] * scale).reshape(nh, 1, D)        # f32
    bk_s = params["bk"].reshape(nh, 1, D)
    bv_s = params["bv"].reshape(nh, 1, D)

    w_out = params["wo"].T @ params["wp"].T                # (C, C), fused in f32
    w_out_s = w_out.reshape(nh, D, C).astype(jnp.bfloat16)  # head row-blocks
    b_out = params["bo"] @ params["wp"].T + params["bp"]   # (1, C) f32

    def const2(b):
        return (0, 0)

    def const3(b):
        return (0, 0, 0)

    in_specs = [
        pl.BlockSpec((None, C, S), lambda b: (b, 0, 0)),               # x (1 batch)
        pl.BlockSpec((1, C), const2), pl.BlockSpec((1, C), const2),    # gamma, beta
        pl.BlockSpec((nh, C, D), const3), pl.BlockSpec((nh, 1, D), const3),  # q
        pl.BlockSpec((nh, C, D), const3), pl.BlockSpec((nh, 1, D), const3),  # k
        pl.BlockSpec((nh, C, D), const3), pl.BlockSpec((nh, 1, D), const3),  # v
        pl.BlockSpec((nh, D, C), const3), pl.BlockSpec((1, C), const2),      # fused out
    ]
    out_spec = pl.BlockSpec((None, C, S), lambda b: (b, 0, 0))

    dense_flops = 8 * B * S * C * C          # qkv (3C wide) + fused out-proj (C)
    attn_flops = 4 * B * S * S * C           # QK^T + PV over all heads
    cost = pl.CostEstimate(
        flops=int(dense_flops + attn_flops),
        transcendentals=int(B * nh * S * S),
        bytes_accessed=int(2 * B * C * S * 4 + 4 * C * C * 2 + 10 * C * 4),
    )

    y_bcs = pl.pallas_call(
        _attention_block_kernel,
        out_shape=jax.ShapeDtypeStruct((B, C, S), jnp.float32),
        grid_spec=pltpu.PrefetchScalarGridSpec(
            num_scalar_prefetch=0,
            grid=(B,),                        # >= 2 whenever B >= 2 (v7x: 2 TCs)
            in_specs=in_specs,
            out_specs=out_spec,
        ),
        compiler_params=pltpu.CompilerParams(
            dimension_semantics=("parallel",),
            vmem_limit_bytes=32 * 1024 * 1024,   # tiny live set; fine on v7x 64 MiB
        ),
        cost_estimate=cost,
    )(
        x_bcs,
        params["gamma"], params["beta"],
        wq_s, bq_s, wk_s, bk_s, wv_s, bv_s,
        w_out_s, b_out,
    )

    return y_bcs.reshape(B, C, Hsp, Wsp)      # pure reshape, no transpose


def attention_block_ref(x_nchw, params):
    """Pure-JAX f32 reference matching the PyTorch forward semantics."""
    B, C, H, W = x_nchw.shape
    S = H * W
    D = C // NUM_HEADS
    x = jnp.transpose(x_nchw.reshape(B, C, S), (0, 2, 1))        # (B, S, C)

    mean = jnp.mean(x, axis=-1, keepdims=True)
    var = jnp.mean(jnp.square(x - mean), axis=-1, keepdims=True)
    xn = (x - mean) / jnp.sqrt(var + LN_EPS)
    xn = xn * params["gamma"][0] + params["beta"][0]

    q = xn @ params["wq"].T + params["bq"][0]
    k = xn @ params["wk"].T + params["bk"][0]
    v = xn @ params["wv"].T + params["bv"][0]

    q = q.reshape(B, S, NUM_HEADS, D)
    k = k.reshape(B, S, NUM_HEADS, D)
    v = v.reshape(B, S, NUM_HEADS, D)
    s = jnp.einsum("bqhd,bkhd->bhqk", q, k) / math.sqrt(D)
    p = jax.nn.softmax(s, axis=-1)
    a = jnp.einsum("bhqk,bkhd->bqhd", p, v).reshape(B, S, C)

    o = a @ params["wo"].T + params["bo"][0]
    y = o @ params["wp"].T + params["bp"][0]
    return jnp.transpose(y, (0, 2, 1)).reshape(B, C, H, W)


def init_params(key, channels):
    ks = jax.random.split(key, 12)
    std = 0.05
    return {
        "gamma": jnp.ones((1, channels), jnp.float32),
        "beta": jnp.zeros((1, channels), jnp.float32),
        "wq": std * jax.random.normal(ks[0], (channels, channels), jnp.float32),
        "bq": std * jax.random.normal(ks[1], (1, channels), jnp.float32),
        "wk": std * jax.random.normal(ks[2], (channels, channels), jnp.float32),
        "bk": std * jax.random.normal(ks[3], (1, channels), jnp.float32),
        "wv": std * jax.random.normal(ks[4], (channels, channels), jnp.float32),
        "bv": std * jax.random.normal(ks[5], (1, channels), jnp.float32),
        "wo": std * jax.random.normal(ks[6], (channels, channels), jnp.float32),
        "bo": std * jax.random.normal(ks[7], (1, channels), jnp.float32),
        "wp": std * jax.random.normal(ks[8], (channels, channels), jnp.float32),
        "bp": std * jax.random.normal(ks[9], (1, channels), jnp.float32),
    }


if __name__ == "__main__":
    B, C, H, W = 2, 32, 8, 8          # channels must be divisible by num_heads=4
    key = jax.random.PRNGKey(0)
    kx, kp = jax.random.split(key)
    x = jax.random.normal(kx, (B, C, H, W), jnp.float32)
    params = init_params(kp, C)

    y = attention_block_pallas(x, params)
    y = jax.block_until_ready(y)

    y_ref = attention_block_ref(x, params)
    assert y.shape == (B, C, H, W)
    # bf16 MXU operands (f32 accumulation) + approx reciprocal -> relaxed tol
    err = float(jnp.max(jnp.abs(y - y_ref)))
    assert err < 2e-2, err

    print("KERNEL_OK")
</pallas_src>

<mosaic_0001>
module attributes {stable_mosaic.version = 11 : i64} {
  func.func @_attention_block_kernel(%arg0: i32, %arg1: memref<1x32x64xf32, #tpu.memory_space<vmem>>, %arg2: memref<1x32xf32, #tpu.memory_space<vmem>>, %arg3: memref<1x32xf32, #tpu.memory_space<vmem>>, %arg4: memref<4x32x8xbf16, #tpu.memory_space<vmem>>, %arg5: memref<4x1x8xf32, #tpu.memory_space<vmem>>, %arg6: memref<4x32x8xbf16, #tpu.memory_space<vmem>>, %arg7: memref<4x1x8xf32, #tpu.memory_space<vmem>>, %arg8: memref<4x32x8xbf16, #tpu.memory_space<vmem>>, %arg9: memref<4x1x8xf32, #tpu.memory_space<vmem>>, %arg10: memref<4x8x32xbf16, #tpu.memory_space<vmem>>, %arg11: memref<1x32xf32, #tpu.memory_space<vmem>>, %arg12: memref<1x32x64xf32, #tpu.memory_space<vmem>>) attributes {dimension_semantics = [#tpu.dimension_semantics<parallel>], iteration_bounds = array<i64: 2>, scalar_prefetch = 0 : i64, scratch_operands = 0 : i64, tpu.core_type = #tpu.core_type<tc>, window_params = [{transform_indices = @transform_0, window_bounds = array<i64: 1, 32, 64>}, {pipeline_mode = #tpu.pipeline_mode<synchronous>, transform_indices = @transform_1, window_bounds = array<i64: 1, 32>}, {pipeline_mode = #tpu.pipeline_mode<synchronous>, transform_indices = @transform_2, window_bounds = array<i64: 1, 32>}, {pipeline_mode = #tpu.pipeline_mode<synchronous>, transform_indices = @transform_3, window_bounds = array<i64: 4, 32, 8>}, {pipeline_mode = #tpu.pipeline_mode<synchronous>, transform_indices = @transform_4, window_bounds = array<i64: 4, 1, 8>}, {pipeline_mode = #tpu.pipeline_mode<synchronous>, transform_indices = @transform_5, window_bounds = array<i64: 4, 32, 8>}, {pipeline_mode = #tpu.pipeline_mode<synchronous>, transform_indices = @transform_6, window_bounds = array<i64: 4, 1, 8>}, {pipeline_mode = #tpu.pipeline_mode<synchronous>, transform_indices = @transform_7, window_bounds = array<i64: 4, 32, 8>}, {pipeline_mode = #tpu.pipeline_mode<synchronous>, transform_indices = @transform_8, window_bounds = array<i64: 4, 1, 8>}, {pipeline_mode = #tpu.pipeline_mode<synchronous>, transform_indices = @transform_9, window_bounds = array<i64: 4, 8, 32>}, {pipeline_mode = #tpu.pipeline_mode<synchronous>, transform_indices = @transform_10, window_bounds = array<i64: 1, 32>}, {transform_indices = @transform_11, window_bounds = array<i64: 1, 32, 64>}]} {
    %c0 = arith.constant 0 : index
    %c0_0 = arith.constant 0 : index
    %c0_1 = arith.constant 0 : index
    %0 = vector.load %arg1[%c0, %c0_0, %c0_1] : memref<1x32x64xf32, #tpu.memory_space<vmem>>, vector<1x32x64xf32>
    %1 = vector.shape_cast %0 : vector<1x32x64xf32> to vector<32x64xf32>
    %2 = tpu.transpose %1, [1, 0] : vector<32x64xf32> -> vector<64x32xf32>
    %cst = arith.constant dense<0.000000e+00> : vector<64xf32>
    %3 = vector.multi_reduction <add>, %2, %cst [1] : vector<64x32xf32> to vector<64xf32>
    %4 = vector.shape_cast %3 : vector<64xf32> to vector<64x1xf32>
    %5 = arith.mulf %2, %2 : vector<64x32xf32>
    %cst_2 = arith.constant dense<0.000000e+00> : vector<64xf32>
    %6 = vector.multi_reduction <add>, %5, %cst_2 [1] : vector<64x32xf32> to vector<64xf32>
    %7 = vector.shape_cast %6 : vector<64xf32> to vector<64x1xf32>
    %cst_3 = arith.constant 3.125000e-02 : f32
    %8 = vector.broadcast %cst_3 : f32 to vector<64x1xf32>
    %9 = arith.mulf %4, %8 : vector<64x1xf32>
    %cst_4 = arith.constant 3.125000e-02 : f32
    %10 = vector.broadcast %cst_4 : f32 to vector<64x1xf32>
    %11 = arith.mulf %7, %10 : vector<64x1xf32>
    %12 = arith.mulf %9, %9 : vector<64x1xf32>
    %13 = arith.subf %11, %12 : vector<64x1xf32>
    %cst_5 = arith.constant 9.99999974E-6 : f32
    %14 = vector.broadcast %cst_5 : f32 to vector<64x1xf32>
    %15 = arith.addf %13, %14 : vector<64x1xf32>
    %16 = math.rsqrt %15 : vector<64x1xf32>
    %17 = vector.broadcast %9 : vector<64x1xf32> to vector<64x32xf32>
    %18 = arith.subf %2, %17 : vector<64x32xf32>
    %19 = vector.broadcast %16 : vector<64x1xf32> to vector<64x32xf32>
    %20 = arith.mulf %18, %19 : vector<64x32xf32>
    %c0_6 = arith.constant 0 : index
    %c0_7 = arith.constant 0 : index
    %21 = vector.load %arg2[%c0_6, %c0_7] : memref<1x32xf32, #tpu.memory_space<vmem>>, vector<1x32xf32>
    %22 = vector.shape_cast %21 : vector<1x32xf32> to vector<32xf32>
    %23 = vector.shape_cast %22 : vector<32xf32> to vector<1x32xf32>
    %24 = vector.broadcast %23 : vector<1x32xf32> to vector<64x32xf32>
    %25 = arith.mulf %20, %24 : vector<64x32xf32>
    %c0_8 = arith.constant 0 : index
    %c0_9 = arith.constant 0 : index
    %26 = vector.load %arg3[%c0_8, %c0_9] : memref<1x32xf32, #tpu.memory_space<vmem>>, vector<1x32xf32>
    %27 = vector.shape_cast %26 : vector<1x32xf32> to vector<32xf32>
    %28 = vector.shape_cast %27 : vector<32xf32> to vector<1x32xf32>
    %29 = vector.broadcast %28 : vector<1x32xf32> to vector<64x32xf32>
    %30 = arith.addf %25, %29 : vector<64x32xf32>
    %31 = arith.truncf %30 : vector<64x32xf32> to vector<64x32xbf16>
    %cst_10 = arith.constant 0.000000e+00 : f32
    %32 = vector.broadcast %cst_10 : f32 to vector<64x32xf32>
    %c0_11 = arith.constant 0 : index
    %c0_12 = arith.constant 0 : index
    %c0_13 = arith.constant 0 : index
    %33 = vector.load %arg4[%c0_11, %c0_12, %c0_13] : memref<4x32x8xbf16, #tpu.memory_space<vmem>>, vector<1x32x8xbf16>
    %34 = vector.shape_cast %33 : vector<1x32x8xbf16> to vector<32x8xbf16>
    %cst_14 = arith.constant dense<0.000000e+00> : vector<64x8xf32>
    %35 = tpu.matmul %31, %34, %cst_14 {dimension_numbers = #tpu.dot_dimension_numbers<[1], [0], [0], [1], [0, 0, 1, 1], [], []>} : vector<64x32xbf16>, vector<32x8xbf16>, vector<64x8xf32> -> vector<64x8xf32>
    %c0_15 = arith.constant 0 : index
    %c0_16 = arith.constant 0 : index
    %c0_17 = arith.constant 0 : index
    %36 = vector.load %arg5[%c0_15, %c0_16, %c0_17] : memref<4x1x8xf32, #tpu.memory_space<vmem>>, vector<1x1x8xf32>
    %37 = vector.shape_cast %36 : vector<1x1x8xf32> to vector<1x8xf32>
    %38 = vector.broadcast %37 : vector<1x8xf32> to vector<64x8xf32>
    %39 = arith.addf %35, %38 : vector<64x8xf32>
    %40 = arith.truncf %39 : vector<64x8xf32> to vector<64x8xbf16>
    %c0_18 = arith.constant 0 : index
    %c0_19 = arith.constant 0 : index
    %c0_20 = arith.constant 0 : index
    %41 = vector.load %arg6[%c0_18, %c0_19, %c0_20] : memref<4x32x8xbf16, #tpu.memory_space<vmem>>, vector<1x32x8xbf16>
    %42 = vector.shape_cast %41 : vector<1x32x8xbf16> to vector<32x8xbf16>
    %cst_21 = arith.constant dense<0.000000e+00> : vector<64x8xf32>
    %43 = tpu.matmul %31, %42, %cst_21 {dimension_numbers = #tpu.dot_dimension_numbers<[1], [0], [0], [1], [0, 0, 1, 1], [], []>} : vector<64x32xbf16>, vector<32x8xbf16>, vector<64x8xf32> -> vector<64x8xf32>
    %c0_22 = arith.constant 0 : index
    %c0_23 = arith.constant 0 : index
    %c0_24 = arith.constant 0 : index
    %44 = vector.load %arg7[%c0_22, %c0_23, %c0_24] : memref<4x1x8xf32, #tpu.memory_space<vmem>>, vector<1x1x8xf32>
    %45 = vector.shape_cast %44 : vector<1x1x8xf32> to vector<1x8xf32>
    %46 = vector.broadcast %45 : vector<1x8xf32> to vector<64x8xf32>
    %47 = arith.addf %43, %46 : vector<64x8xf32>
    %48 = arith.truncf %47 : vector<64x8xf32> to vector<64x8xbf16>
    %c0_25 = arith.constant 0 : index
    %c0_26 = arith.constant 0 : index
    %c0_27 = arith.constant 0 : index
    %49 = vector.load %arg8[%c0_25, %c0_26, %c0_27] : memref<4x32x8xbf16, #tpu.memory_space<vmem>>, vector<1x32x8xbf16>
    %50 = vector.shape_cast %49 : vector<1x32x8xbf16> to vector<32x8xbf16>
    %cst_28 = arith.constant dense<0.000000e+00> : vector<64x8xf32>
    %51 = tpu.matmul %31, %50, %cst_28 {dimension_numbers = #tpu.dot_dimension_numbers<[1], [0], [0], [1], [0, 0, 1, 1], [], []>} : vector<64x32xbf16>, vector<32x8xbf16>, vector<64x8xf32> -> vector<64x8xf32>
    %c0_29 = arith.constant 0 : index
    %c0_30 = arith.constant 0 : index
    %c0_31 = arith.constant 0 : index
    %52 = vector.load %arg9[%c0_29, %c0_30, %c0_31] : memref<4x1x8xf32, #tpu.memory_space<vmem>>, vector<1x1x8xf32>
    %53 = vector.shape_cast %52 : vector<1x1x8xf32> to vector<1x8xf32>
    %54 = vector.broadcast %53 : vector<1x8xf32> to vector<64x8xf32>
    %55 = arith.addf %51, %54 : vector<64x8xf32>
    %56 = arith.truncf %55 : vector<64x8xf32> to vector<64x8xbf16>
    %cst_32 = arith.constant dense<0.000000e+00> : vector<64x64xf32>
    %57 = tpu.matmul %40, %48, %cst_32 {dimension_numbers = #tpu.dot_dimension_numbers<[1], [1], [0], [0], [0, 0, 1, 0], [], []>} : vector<64x8xbf16>, vector<64x8xbf16>, vector<64x64xf32> -> vector<64x64xf32>
    %cst_33 = arith.constant dense<0xFF800000> : vector<64xf32>
    %58 = vector.multi_reduction <maximumf>, %57, %cst_33 [1] : vector<64x64xf32> to vector<64xf32>
    %59 = vector.shape_cast %58 : vector<64xf32> to vector<64x1xf32>
    %60 = vector.broadcast %59 : vector<64x1xf32> to vector<64x64xf32>
    %61 = arith.subf %57, %60 : vector<64x64xf32>
    %62 = math.exp %61 : vector<64x64xf32>
    %cst_34 = arith.constant dense<0.000000e+00> : vector<64xf32>
    %63 = vector.multi_reduction <add>, %62, %cst_34 [1] : vector<64x64xf32> to vector<64xf32>
    %64 = vector.shape_cast %63 : vector<64xf32> to vector<64x1xf32>
    %65 = arith.truncf %62 : vector<64x64xf32> to vector<64x64xbf16>
    %cst_35 = arith.constant dense<0.000000e+00> : vector<64x8xf32>
    %66 = tpu.matmul %65, %56, %cst_35 {dimension_numbers = #tpu.dot_dimension_numbers<[1], [0], [0], [1], [0, 0, 1, 1], [], []>} : vector<64x64xbf16>, vector<64x8xbf16>, vector<64x8xf32> -> vector<64x8xf32>
    %67 = tpu.reciprocal %64 {approx = true} : vector<64x1xf32> -> vector<64x1xf32>
    %68 = vector.broadcast %67 : vector<64x1xf32> to vector<64x8xf32>
    %69 = arith.mulf %66, %68 : vector<64x8xf32>
    %70 = arith.truncf %69 : vector<64x8xf32> to vector<64x8xbf16>
    %c0_36 = arith.constant 0 : index
    %c0_37 = arith.constant 0 : index
    %c0_38 = arith.constant 0 : index
    %71 = vector.load %arg10[%c0_36, %c0_37, %c0_38] : memref<4x8x32xbf16, #tpu.memory_space<vmem>>, vector<1x8x32xbf16>
    %72 = vector.shape_cast %71 : vector<1x8x32xbf16> to vector<8x32xbf16>
    %cst_39 = arith.constant dense<0.000000e+00> : vector<64x32xf32>
    %73 = tpu.matmul %70, %72, %cst_39 {dimension_numbers = #tpu.dot_dimension_numbers<[1], [0], [0], [1], [0, 0, 1, 1], [], []>} : vector<64x8xbf16>, vector<8x32xbf16>, vector<64x32xf32> -> vector<64x32xf32>
    %74 = arith.addf %32, %73 : vector<64x32xf32>
    %c1 = arith.constant 1 : index
    %c0_40 = arith.constant 0 : index
    %c0_41 = arith.constant 0 : index
    %75 = vector.load %arg4[%c1, %c0_40, %c0_41] : memref<4x32x8xbf16, #tpu.memory_space<vmem>>, vector<1x32x8xbf16>
    %76 = vector.shape_cast %75 : vector<1x32x8xbf16> to vector<32x8xbf16>
    %cst_42 = arith.constant dense<0.000000e+00> : vector<64x8xf32>
    %77 = tpu.matmul %31, %76, %cst_42 {dimension_numbers = #tpu.dot_dimension_numbers<[1], [0], [0], [1], [0, 0, 1, 1], [], []>} : vector<64x32xbf16>, vector<32x8xbf16>, vector<64x8xf32> -> vector<64x8xf32>
    %c1_43 = arith.constant 1 : index
    %c0_44 = arith.constant 0 : index
    %c0_45 = arith.constant 0 : index
    %78 = vector.load %arg5[%c1_43, %c0_44, %c0_45] : memref<4x1x8xf32, #tpu.memory_space<vmem>>, vector<1x1x8xf32>
    %79 = vector.shape_cast %78 : vector<1x1x8xf32> to vector<1x8xf32>
    %80 = vector.broadcast %79 : vector<1x8xf32> to vector<64x8xf32>
    %81 = arith.addf %77, %80 : vector<64x8xf32>
    %82 = arith.truncf %81 : vector<64x8xf32> to vector<64x8xbf16>
    %c1_46 = arith.constant 1 : index
    %c0_47 = arith.constant 0 : index
    %c0_48 = arith.constant 0 : index
    %83 = vector.load %arg6[%c1_46, %c0_47, %c0_48] : memref<4x32x8xbf16, #tpu.memory_space<vmem>>, vector<1x32x8xbf16>
    %84 = vector.shape_cast %83 : vector<1x32x8xbf16> to vector<32x8xbf16>
    %cst_49 = arith.constant dense<0.000000e+00> : vector<64x8xf32>
    %85 = tpu.matmul %31, %84, %cst_49 {dimension_numbers = #tpu.dot_dimension_numbers<[1], [0], [0], [1], [0, 0, 1, 1], [], []>} : vector<64x32xbf16>, vector<32x8xbf16>, vector<64x8xf32> -> vector<64x8xf32>
    %c1_50 = arith.constant 1 : index
    %c0_51 = arith.constant 0 : index
    %c0_52 = arith.constant 0 : index
    %86 = vector.load %arg7[%c1_50, %c0_51, %c0_52] : memref<4x1x8xf32, #tpu.memory_space<vmem>>, vector<1x1x8xf32>
    %87 = vector.shape_cast %86 : vector<1x1x8xf32> to vector<1x8xf32>
    %88 = vector.broadcast %87 : vector<1x8xf32> to vector<64x8xf32>
    %89 = arith.addf %85, %88 : vector<64x8xf32>
    %90 = arith.truncf %89 : vector<64x8xf32> to vector<64x8xbf16>
    %c1_53 = arith.constant 1 : index
    %c0_54 = arith.constant 0 : index
    %c0_55 = arith.constant 0 : index
    %91 = vector.load %arg8[%c1_53, %c0_54, %c0_55] : memref<4x32x8xbf16, #tpu.memory_space<vmem>>, vector<1x32x8xbf16>
    %92 = vector.shape_cast %91 : vector<1x32x8xbf16> to vector<32x8xbf16>
    %cst_56 = arith.constant dense<0.000000e+00> : vector<64x8xf32>
    %93 = tpu.matmul %31, %92, %cst_56 {dimension_numbers = #tpu.dot_dimension_numbers<[1], [0], [0], [1], [0, 0, 1, 1], [], []>} : vector<64x32xbf16>, vector<32x8xbf16>, vector<64x8xf32> -> vector<64x8xf32>
    %c1_57 = arith.constant 1 : index
    %c0_58 = arith.constant 0 : index
    %c0_59 = arith.constant 0 : index
    %94 = vector.load %arg9[%c1_57, %c0_58, %c0_59] : memref<4x1x8xf32, #tpu.memory_space<vmem>>, vector<1x1x8xf32>
    %95 = vector.shape_cast %94 : vector<1x1x8xf32> to vector<1x8xf32>
    %96 = vector.broadcast %95 : vector<1x8xf32> to vector<64x8xf32>
    %97 = arith.addf %93, %96 : vector<64x8xf32>
    %98 = arith.truncf %97 : vector<64x8xf32> to vector<64x8xbf16>
    %cst_60 = arith.constant dense<0.000000e+00> : vector<64x64xf32>
    %99 = tpu.matmul %82, %90, %cst_60 {dimension_numbers = #tpu.dot_dimension_numbers<[1], [1], [0], [0], [0, 0, 1, 0], [], []>} : vector<64x8xbf16>, vector<64x8xbf16>, vector<64x64xf32> -> vector<64x64xf32>
    %cst_61 = arith.constant dense<0xFF800000> : vector<64xf32>
    %100 = vector.multi_reduction <maximumf>, %99, %cst_61 [1] : vector<64x64xf32> to vector<64xf32>
    %101 = vector.shape_cast %100 : vector<64xf32> to vector<64x1xf32>
    %102 = vector.broadcast %101 : vector<64x1xf32> to vector<64x64xf32>
    %103 = arith.subf %99, %102 : vector<64x64xf32>
    %104 = math.exp %103 : vector<64x64xf32>
    %cst_62 = arith.constant dense<0.000000e+00> : vector<64xf32>
    %105 = vector.multi_reduction <add>, %104, %cst_62 [1] : vector<64x64xf32> to vector<64xf32>
    %106 = vector.shape_cast %105 : vector<64xf32> to vector<64x1xf32>
    %107 = arith.truncf %104 : vector<64x64xf32> to vector<64x64xbf16>
    %cst_63 = arith.constant dense<0.000000e+00> : vector<64x8xf32>
    %108 = tpu.matmul %107, %98, %cst_63 {dimension_numbers = #tpu.dot_dimension_numbers<[1], [0], [0], [1], [0, 0, 1, 1], [], []>} : vector<64x64xbf16>, vector<64x8xbf16>, vector<64x8xf32> -> vector<64x8xf32>
    %109 = tpu.reciprocal %106 {approx = true} : vector<64x1xf32> -> vector<64x1xf32>
    %110 = vector.broadcast %109 : vector<64x1xf32> to vector<64x8xf32>
    %111 = arith.mulf %108, %110 : vector<64x8xf32>
    %112 = arith.truncf %111 : vector<64x8xf32> to vector<64x8xbf16>
    %c1_64 = arith.constant 1 : index
    %c0_65 = arith.constant 0 : index
    %c0_66 = arith.constant 0 : index
    %113 = vector.load %arg10[%c1_64, %c0_65, %c0_66] : memref<4x8x32xbf16, #tpu.memory_space<vmem>>, vector<1x8x32xbf16>
    %114 = vector.shape_cast %113 : vector<1x8x32xbf16> to vector<8x32xbf16>
    %cst_67 = arith.constant dense<0.000000e+00> : vector<64x32xf32>
    %115 = tpu.matmul %112, %114, %cst_67 {dimension_numbers = #tpu.dot_dimension_numbers<[1], [0], [0], [1], [0, 0, 1, 1], [], []>} : vector<64x8xbf16>, vector<8x32xbf16>, vector<64x32xf32> -> vector<64x32xf32>
    %116 = arith.addf %74, %115 : vector<64x32xf32>
    %c2 = arith.constant 2 : index
    %c0_68 = arith.constant 0 : index
    %c0_69 = arith.constant 0 : index
    %117 = vector.load %arg4[%c2, %c0_68, %c0_69] : memref<4x32x8xbf16, #tpu.memory_space<vmem>>, vector<1x32x8xbf16>
    %118 = vector.shape_cast %117 : vector<1x32x8xbf16> to vector<32x8xbf16>
    %cst_70 = arith.constant dense<0.000000e+00> : vector<64x8xf32>
    %119 = tpu.matmul %31, %118, %cst_70 {dimension_numbers = #tpu.dot_dimension_numbers<[1], [0], [0], [1], [0, 0, 1, 1], [], []>} : vector<64x32xbf16>, vector<32x8xbf16>, vector<64x8xf32> -> vector<64x8xf32>
    %c2_71 = arith.constant 2 : index
    %c0_72 = arith.constant 0 : index
    %c0_73 = arith.constant 0 : index
    %120 = vector.load %arg5[%c2_71, %c0_72, %c0_73] : memref<4x1x8xf32, #tpu.memory_space<vmem>>, vector<1x1x8xf32>
    %121 = vector.shape_cast %120 : vector<1x1x8xf32> to vector<1x8xf32>
    %122 = vector.broadcast %121 : vector<1x8xf32> to vector<64x8xf32>
    %123 = arith.addf %119, %122 : vector<64x8xf32>
    %124 = arith.truncf %123 : vector<64x8xf32> to vector<64x8xbf16>
    %c2_74 = arith.constant 2 : index
    %c0_75 = arith.constant 0 : index
    %c0_76 = arith.constant 0 : index
    %125 = vector.load %arg6[%c2_74, %c0_75, %c0_76] : memref<4x32x8xbf16, #tpu.memory_space<vmem>>, vector<1x32x8xbf16>
    %126 = vector.shape_cast %125 : vector<1x32x8xbf16> to vector<32x8xbf16>
    %cst_77 = arith.constant dense<0.000000e+00> : vector<64x8xf32>
    %127 = tpu.matmul %31, %126, %cst_77 {dimension_numbers = #tpu.dot_dimension_numbers<[1], [0], [0], [1], [0, 0, 1, 1], [], []>} : vector<64x32xbf16>, vector<32x8xbf16>, vector<64x8xf32> -> vector<64x8xf32>
    %c2_78 = arith.constant 2 : index
    %c0_79 = arith.constant 0 : index
    %c0_80 = arith.constant 0 : index
    %128 = vector.load %arg7[%c2_78, %c0_79, %c0_80] : memref<4x1x8xf32, #tpu.memory_space<vmem>>, vector<1x1x8xf32>
    %129 = vector.shape_cast %128 : vector<1x1x8xf32> to vector<1x8xf32>
    %130 = vector.broadcast %129 : vector<1x8xf32> to vector<64x8xf32>
    %131 = arith.addf %127, %130 : vector<64x8xf32>
    %132 = arith.truncf %131 : vector<64x8xf32> to vector<64x8xbf16>
    %c2_81 = arith.constant 2 : index
    %c0_82 = arith.constant 0 : index
    %c0_83 = arith.constant 0 : index
    %133 = vector.load %arg8[%c2_81, %c0_82, %c0_83] : memref<4x32x8xbf16, #tpu.memory_space<vmem>>, vector<1x32x8xbf16>
    %134 = vector.shape_cast %133 : vector<1x32x8xbf16> to vector<32x8xbf16>
    %cst_84 = arith.constant dense<0.000000e+00> : vector<64x8xf32>
    %135 = tpu.matmul %31, %134, %cst_84 {dimension_numbers = #tpu.dot_dimension_numbers<[1], [0], [0], [1], [0, 0, 1, 1], [], []>} : vector<64x32xbf16>, vector<32x8xbf16>, vector<64x8xf32> -> vector<64x8xf32>
    %c2_85 = arith.constant 2 : index
    %c0_86 = arith.constant 0 : index
    %c0_87 = arith.constant 0 : index
    %136 = vector.load %arg9[%c2_85, %c0_86, %c0_87] : memref<4x1x8xf32, #tpu.memory_space<vmem>>, vector<1x1x8xf32>
    %137 = vector.shape_cast %136 : vector<1x1x8xf32> to vector<1x8xf32>
    %138 = vector.broadcast %137 : vector<1x8xf32> to vector<64x8xf32>
    %139 = arith.addf %135, %138 : vector<64x8xf32>
    %140 = arith.truncf %139 : vector<64x8xf32> to vector<64x8xbf16>
    %cst_88 = arith.constant dense<0.000000e+00> : vector<64x64xf32>
    %141 = tpu.matmul %124, %132, %cst_88 {dimension_numbers = #tpu.dot_dimension_numbers<[1], [1], [0], [0], [0, 0, 1, 0], [], []>} : vector<64x8xbf16>, vector<64x8xbf16>, vector<64x64xf32> -> vector<64x64xf32>
    %cst_89 = arith.constant dense<0xFF800000> : vector<64xf32>
    %142 = vector.multi_reduction <maximumf>, %141, %cst_89 [1] : vector<64x64xf32> to vector<64xf32>
    %143 = vector.shape_cast %142 : vector<64xf32> to vector<64x1xf32>
    %144 = vector.broadcast %143 : vector<64x1xf32> to vector<64x64xf32>
    %145 = arith.subf %141, %144 : vector<64x64xf32>
    %146 = math.exp %145 : vector<64x64xf32>
    %cst_90 = arith.constant dense<0.000000e+00> : vector<64xf32>
    %147 = vector.multi_reduction <add>, %146, %cst_90 [1] : vector<64x64xf32> to vector<64xf32>
    %148 = vector.shape_cast %147 : vector<64xf32> to vector<64x1xf32>
    %149 = arith.truncf %146 : vector<64x64xf32> to vector<64x64xbf16>
    %cst_91 = arith.constant dense<0.000000e+00> : vector<64x8xf32>
    %150 = tpu.matmul %149, %140, %cst_91 {dimension_numbers = #tpu.dot_dimension_numbers<[1], [0], [0], [1], [0, 0, 1, 1], [], []>} : vector<64x64xbf16>, vector<64x8xbf16>, vector<64x8xf32> -> vector<64x8xf32>
    %151 = tpu.reciprocal %148 {approx = true} : vector<64x1xf32> -> vector<64x1xf32>
    %152 = vector.broadcast %151 : vector<64x1xf32> to vector<64x8xf32>
    %153 = arith.mulf %150, %152 : vector<64x8xf32>
    %154 = arith.truncf %153 : vector<64x8xf32> to vector<64x8xbf16>
    %c2_92 = arith.constant 2 : index
    %c0_93 = arith.constant 0 : index
    %c0_94 = arith.constant 0 : index
    %155 = vector.load %arg10[%c2_92, %c0_93, %c0_94] : memref<4x8x32xbf16, #tpu.memory_space<vmem>>, vector<1x8x32xbf16>
    %156 = vector.shape_cast %155 : vector<1x8x32xbf16> to vector<8x32xbf16>
    %cst_95 = arith.constant dense<0.000000e+00> : vector<64x32xf32>
    %157 = tpu.matmul %154, %156, %cst_95 {dimension_numbers = #tpu.dot_dimension_numbers<[1], [0], [0], [1], [0, 0, 1, 1], [], []>} : vector<64x8xbf16>, vector<8x32xbf16>, vector<64x32xf32> -> vector<64x32xf32>
    %158 = arith.addf %116, %157 : vector<64x32xf32>
    %c3 = arith.constant 3 : index
    %c0_96 = arith.constant 0 : index
    %c0_97 = arith.constant 0 : index
    %159 = vector.load %arg4[%c3, %c0_96, %c0_97] : memref<4x32x8xbf16, #tpu.memory_space<vmem>>, vector<1x32x8xbf16>
    %160 = vector.shape_cast %159 : vector<1x32x8xbf16> to vector<32x8xbf16>
    %cst_98 = arith.constant dense<0.000000e+00> : vector<64x8xf32>
    %161 = tpu.matmul %31, %160, %cst_98 {dimension_numbers = #tpu.dot_dimension_numbers<[1], [0], [0], [1], [0, 0, 1, 1], [], []>} : vector<64x32xbf16>, vector<32x8xbf16>, vector<64x8xf32> -> vector<64x8xf32>
    %c3_99 = arith.constant 3 : index
    %c0_100 = arith.constant 0 : index
    %c0_101 = arith.constant 0 : index
    %162 = vector.load %arg5[%c3_99, %c0_100, %c0_101] : memref<4x1x8xf32, #tpu.memory_space<vmem>>, vector<1x1x8xf32>
    %163 = vector.shape_cast %162 : vector<1x1x8xf32> to vector<1x8xf32>
    %164 = vector.broadcast %163 : vector<1x8xf32> to vector<64x8xf32>
    %165 = arith.addf %161, %164 : vector<64x8xf32>
    %166 = arith.truncf %165 : vector<64x8xf32> to vector<64x8xbf16>
    %c3_102 = arith.constant 3 : index
    %c0_103 = arith.constant 0 : index
    %c0_104 = arith.constant 0 : index
    %167 = vector.load %arg6[%c3_102, %c0_103, %c0_104] : memref<4x32x8xbf16, #tpu.memory_space<vmem>>, vector<1x32x8xbf16>
    %168 = vector.shape_cast %167 : vector<1x32x8xbf16> to vector<32x8xbf16>
    %cst_105 = arith.constant dense<0.000000e+00> : vector<64x8xf32>
    %169 = tpu.matmul %31, %168, %cst_105 {dimension_numbers = #tpu.dot_dimension_numbers<[1], [0], [0], [1], [0, 0, 1, 1], [], []>} : vector<64x32xbf16>, vector<32x8xbf16>, vector<64x8xf32> -> vector<64x8xf32>
    %c3_106 = arith.constant 3 : index
    %c0_107 = arith.constant 0 : index
    %c0_108 = arith.constant 0 : index
    %170 = vector.load %arg7[%c3_106, %c0_107, %c0_108] : memref<4x1x8xf32, #tpu.memory_space<vmem>>, vector<1x1x8xf32>
    %171 = vector.shape_cast %170 : vector<1x1x8xf32> to vector<1x8xf32>
    %172 = vector.broadcast %171 : vector<1x8xf32> to vector<64x8xf32>
    %173 = arith.addf %169, %172 : vector<64x8xf32>
    %174 = arith.truncf %173 : vector<64x8xf32> to vector<64x8xbf16>
    %c3_109 = arith.constant 3 : index
    %c0_110 = arith.constant 0 : index
    %c0_111 = arith.constant 0 : index
    %175 = vector.load %arg8[%c3_109, %c0_110, %c0_111] : memref<4x32x8xbf16, #tpu.memory_space<vmem>>, vector<1x32x8xbf16>
    %176 = vector.shape_cast %175 : vector<1x32x8xbf16> to vector<32x8xbf16>
    %cst_112 = arith.constant dense<0.000000e+00> : vector<64x8xf32>
    %177 = tpu.matmul %31, %176, %cst_112 {dimension_numbers = #tpu.dot_dimension_numbers<[1], [0], [0], [1], [0, 0, 1, 1], [], []>} : vector<64x32xbf16>, vector<32x8xbf16>, vector<64x8xf32> -> vector<64x8xf32>
    %c3_113 = arith.constant 3 : index
    %c0_114 = arith.constant 0 : index
    %c0_115 = arith.constant 0 : index
    %178 = vector.load %arg9[%c3_113, %c0_114, %c0_115] : memref<4x1x8xf32, #tpu.memory_space<vmem>>, vector<1x1x8xf32>
    %179 = vector.shape_cast %178 : vector<1x1x8xf32> to vector<1x8xf32>
    %180 = vector.broadcast %179 : vector<1x8xf32> to vector<64x8xf32>
    %181 = arith.addf %177, %180 : vector<64x8xf32>
    %182 = arith.truncf %181 : vector<64x8xf32> to vector<64x8xbf16>
    %cst_116 = arith.constant dense<0.000000e+00> : vector<64x64xf32>
    %183 = tpu.matmul %166, %174, %cst_116 {dimension_numbers = #tpu.dot_dimension_numbers<[1], [1], [0], [0], [0, 0, 1, 0], [], []>} : vector<64x8xbf16>, vector<64x8xbf16>, vector<64x64xf32> -> vector<64x64xf32>
    %cst_117 = arith.constant dense<0xFF800000> : vector<64xf32>
    %184 = vector.multi_reduction <maximumf>, %183, %cst_117 [1] : vector<64x64xf32> to vector<64xf32>
    %185 = vector.shape_cast %184 : vector<64xf32> to vector<64x1xf32>
    %186 = vector.broadcast %185 : vector<64x1xf32> to vector<64x64xf32>
    %187 = arith.subf %183, %186 : vector<64x64xf32>
    %188 = math.exp %187 : vector<64x64xf32>
    %cst_118 = arith.constant dense<0.000000e+00> : vector<64xf32>
    %189 = vector.multi_reduction <add>, %188, %cst_118 [1] : vector<64x64xf32> to vector<64xf32>
    %190 = vector.shape_cast %189 : vector<64xf32> to vector<64x1xf32>
    %191 = arith.truncf %188 : vector<64x64xf32> to vector<64x64xbf16>
    %cst_119 = arith.constant dense<0.000000e+00> : vector<64x8xf32>
    %192 = tpu.matmul %191, %182, %cst_119 {dimension_numbers = #tpu.dot_dimension_numbers<[1], [0], [0], [1], [0, 0, 1, 1], [], []>} : vector<64x64xbf16>, vector<64x8xbf16>, vector<64x8xf32> -> vector<64x8xf32>
    %193 = tpu.reciprocal %190 {approx = true} : vector<64x1xf32> -> vector<64x1xf32>
    %194 = vector.broadcast %193 : vector<64x1xf32> to vector<64x8xf32>
    %195 = arith.mulf %192, %194 : vector<64x8xf32>
    %196 = arith.truncf %195 : vector<64x8xf32> to vector<64x8xbf16>
    %c3_120 = arith.constant 3 : index
    %c0_121 = arith.constant 0 : index
    %c0_122 = arith.constant 0 : index
    %197 = vector.load %arg10[%c3_120, %c0_121, %c0_122] : memref<4x8x32xbf16, #tpu.memory_space<vmem>>, vector<1x8x32xbf16>
    %198 = vector.shape_cast %197 : vector<1x8x32xbf16> to vector<8x32xbf16>
    %cst_123 = arith.constant dense<0.000000e+00> : vector<64x32xf32>
    %199 = tpu.matmul %196, %198, %cst_123 {dimension_numbers = #tpu.dot_dimension_numbers<[1], [0], [0], [1], [0, 0, 1, 1], [], []>} : vector<64x8xbf16>, vector<8x32xbf16>, vector<64x32xf32> -> vector<64x32xf32>
    %200 = arith.addf %158, %199 : vector<64x32xf32>
    %c0_124 = arith.constant 0 : index
    %c0_125 = arith.constant 0 : index
    %201 = vector.load %arg11[%c0_124, %c0_125] : memref<1x32xf32, #tpu.memory_space<vmem>>, vector<1x32xf32>
    %202 = vector.shape_cast %201 : vector<1x32xf32> to vector<32xf32>
    %203 = vector.shape_cast %202 : vector<32xf32> to vector<1x32xf32>
    %204 = vector.broadcast %203 : vector<1x32xf32> to vector<64x32xf32>
    %205 = arith.addf %200, %204 : vector<64x32xf32>
    %206 = tpu.transpose %205, [1, 0] : vector<64x32xf32> -> vector<32x64xf32>
    %c0_126 = arith.constant 0 : index
    %c0_127 = arith.constant 0 : index
    %c0_128 = arith.constant 0 : index
    %207 = vector.load %arg12[%c0_126, %c0_127, %c0_128] : memref<1x32x64xf32, #tpu.memory_space<vmem>>, vector<1x32x64xf32>
    %208 = vector.shape_cast %207 : vector<1x32x64xf32> to vector<32x64xf32>
    %209 = vector.shape_cast %206 : vector<32x64xf32> to vector<1x32x64xf32>
    tpu.vector_store %arg12[%c0_126, %c0_127, %c0_128], %209 {strides = array<i32>} : memref<1x32x64xf32, #tpu.memory_space<vmem>>, vector<1x32x64xf32>,
    return
  }
  func.func @transform_0(%arg0: i32) -> (i32, i32, i32) {
    %c0_i32 = arith.constant 0 : i32
    %c0_i32_0 = arith.constant 0 : i32
    %c0_i32_1 = arith.constant 0 : i32
    return %arg0, %c0_i32, %c0_i32_0 : i32, i32, i32
  }
  func.func @transform_1(%arg0: i32) -> (i32, i32) {
    %c0_i32 = arith.constant 0 : i32
    %c0_i32_0 = arith.constant 0 : i32
    %c0_i32_1 = arith.constant 0 : i32
    return %c0_i32, %c0_i32_0 : i32, i32
  }
  func.func @transform_2(%arg0: i32) -> (i32, i32) {
    %c0_i32 = arith.constant 0 : i32
    %c0_i32_0 = arith.constant 0 : i32
    %c0_i32_1 = arith.constant 0 : i32
    return %c0_i32, %c0_i32_0 : i32, i32
  }
  func.func @transform_3(%arg0: i32) -> (i32, i32, i32) {
    %c0_i32 = arith.constant 0 : i32
    %c0_i32_0 = arith.constant 0 : i32
    %c0_i32_1 = arith.constant 0 : i32
    %c0_i32_2 = arith.constant 0 : i32
    return %c0_i32, %c0_i32_0, %c0_i32_1 : i32, i32, i32
  }
  func.func @transform_4(%arg0: i32) -> (i32, i32, i32) {
    %c0_i32 = arith.constant 0 : i32
    %c0_i32_0 = arith.constant 0 : i32
    %c0_i32_1 = arith.constant 0 : i32
    %c0_i32_2 = arith.constant 0 : i32
    return %c0_i32, %c0_i32_0, %c0_i32_1 : i32, i32, i32
  }
  func.func @transform_5(%arg0: i32) -> (i32, i32, i32) {
    %c0_i32 = arith.constant 0 : i32
    %c0_i32_0 = arith.constant 0 : i32
    %c0_i32_1 = arith.constant 0 : i32
    %c0_i32_2 = arith.constant 0 : i32
    return %c0_i32, %c0_i32_0, %c0_i32_1 : i32, i32, i32
  }
  func.func @transform_6(%arg0: i32) -> (i32, i32, i32) {
    %c0_i32 = arith.constant 0 : i32
    %c0_i32_0 = arith.constant 0 : i32
    %c0_i32_1 = arith.constant 0 : i32
    %c0_i32_2 = arith.constant 0 : i32
    return %c0_i32, %c0_i32_0, %c0_i32_1 : i32, i32, i32
  }
  func.func @transform_7(%arg0: i32) -> (i32, i32, i32) {
    %c0_i32 = arith.constant 0 : i32
    %c0_i32_0 = arith.constant 0 : i32
    %c0_i32_1 = arith.constant 0 : i32
    %c0_i32_2 = arith.constant 0 : i32
    return %c0_i32, %c0_i32_0, %c0_i32_1 : i32, i32, i32
  }
  func.func @transform_8(%arg0: i32) -> (i32, i32, i32) {
    %c0_i32 = arith.constant 0 : i32
    %c0_i32_0 = arith.constant 0 : i32
    %c0_i32_1 = arith.constant 0 : i32
    %c0_i32_2 = arith.constant 0 : i32
    return %c0_i32, %c0_i32_0, %c0_i32_1 : i32, i32, i32
  }
  func.func @transform_9(%arg0: i32) -> (i32, i32, i32) {
    %c0_i32 = arith.constant 0 : i32
    %c0_i32_0 = arith.constant 0 : i32
    %c0_i32_1 = arith.constant 0 : i32
    %c0_i32_2 = arith.constant 0 : i32
    return %c0_i32, %c0_i32_0, %c0_i32_1 : i32, i32, i32
  }
  func.func @transform_10(%arg0: i32) -> (i32, i32) {
    %c0_i32 = arith.constant 0 : i32
    %c0_i32_0 = arith.constant 0 : i32
    %c0_i32_1 = arith.constant 0 : i32
    return %c0_i32, %c0_i32_0 : i32, i32
  }
  func.func @transform_11(%arg0: i32) -> (i32, i32, i32) {
    %c0_i32 = arith.constant 0 : i32
    %c0_i32_0 = arith.constant 0 : i32
    %c0_i32_1 = arith.constant 0 : i32
    return %arg0, %c0_i32, %c0_i32_0 : i32, i32, i32
  }
}

</mosaic_0001>

<bundles_post_ra>
// kernel: tpu_custom_call.1
= control target key start
LH: loop header
LB: loop body
LE: loop exit
PB: predicated region body
PF: predicated region fallthrough
CT: control target
= control target key end

     0   :  { %s5084_s0 = inlined_call_operand.vmem [shape: f32[2,32,64], index: 0, kind: input, shape index: {}]   ;;  %s5085_s1 = inlined_call_operand.vmem [shape: f32[1,32], index: 1, kind: input, shape index: {}]   ;;  %s5086_s2 = inlined_call_operand.vmem [shape: f32[1,32], index: 2, kind: input, shape index: {}]   ;;  %s5087_s3 = inlined_call_operand.vmem [shape: bf16[4,32,8], index: 3, kind: input, shape index: {}]   ;;  %s5088_s4 = inlined_call_operand.vmem [shape: f32[4,1,8], index: 4, kind: input, shape index: {}]   ;;  %s5089_s5 = inlined_call_operand.vmem [shape: bf16[4,32,8], index: 5, kind: input, shape index: {}]   ;;  %s5090_s6 = inlined_call_operand.vmem [shape: f32[4,1,8], index: 6, kind: input, shape index: {}]   ;;  %s5091_s7 = inlined_call_operand.vmem [shape: bf16[4,32,8], index: 7, kind: input, shape index: {}]   ;;  %s5092_s8 = inlined_call_operand.vmem [shape: f32[4,1,8], index: 8, kind: input, shape index: {}]   ;;  %s5093_s9 = inlined_call_operand.vmem [shape: bf16[4,8,32], index: 9, kind: input, shape index: {}]   ;;  %s5094_s10 = inlined_call_operand.vmem [shape: f32[1,32], index: 10, kind: input, shape index: {}]   ;;  %s5095_s11 = inlined_call_operand.hbm [shape: f32[2,32,64], index: 11, kind: output, shape index: {}]  }
   0x1   :  { %5096 = sst [smem:[#allocation5_spill]] %s5084_s0 }
   0x2   :  { %16 = vsyncpa [#allocation3], 0 }
   0x3   :  { %18 = vsyncpa [#allocation3 + $0x1], 0  ;;  %s4252_s17 = smov 0   ;;  %s4254_s18 = smov 0  }
   0x4   :  { %s4256_s19 = smov 0   ;;  %s4258_s20 = smov 0  }
   0x5 LB: > { %s4273_s21 = sadd.s32 4294967295, %s4187_s20   ;;  %s3232_s22 = sadd.s32 4294967294, %s4187_s20   ;;  %s4187_s20 = sphi %s4258_s20, %s5103_s20   ;;  %s4183_s19 = sphi %s4256_s19, %s5102_s19   ;;  %s4179_s18 = sphi %s4254_s18, %s5101_s18   ;;  %s4175_s17 = sphi %s4252_s17, %s5100_s17  }
   0x6   : > { %s4277_s23 = sadd.s32 1, %s4187_s20   ;;  %s267_s24 = sadd.s32 1, %s4183_s19 }
   0x7   : > { %s264_s25 = ssub.s32 %s4187_s20, %s4277_s23  ;;  %p277_p0 = scmp.ne.s32.totalorder %s4183_s19, %s4179_s18 }
   0x8   : > { %p265_p1 = scmp.eq.s32.totalorder %s264_s25, 0  ;;  %p278_p2 = scmp.eq.s32.totalorder %s4273_s21, 1 }
   0x9   : > { %p283_p3 = scmp.ne.s32.totalorder %s4179_s18, %s4175_s17  ;;  %p284_p4 = scmp.eq.s32.totalorder %s3232_s22, 1 }
   0xa   : > { %s4288_s26 = scalar_select %p265_p1, %s4183_s19, %s267_s24  }
   0xb   : > { %p4290_p5 = por %p278_p2, %p277_p0  ;;  %p4294_p6 = por %p284_p4, %p283_p3 }
   0xc   : > { %p3235_p7 = scmp.ge.s32.totalorder %s4187_s20, 1  ;;  %p340_p8 = scmp.lt.s32.totalorder %s4187_s20, 3 }
   0xe   : > { %p341_p9 = pnand %p3235_p7, %p340_p8 }
   0xf   : > { %p380_p10 = scmp.lt.s32.totalorder (!%p341_p9), %s4273_s21, 1  ;;  %s5099_s0 = sld [smem:[#allocation5_spill]] (!%p341_p9) }
  0x10   : > { %344 = sbr.rel (%p341_p9) target bundleno = 3719 (0xe87), region = 64  ;;  %s3428_s15 = sshll.u32 (!%p341_p9), %s4273_s21, 9 }
  0x11   : > { %s5041_s24 = scalar_lea.hbm (!%p341_p9), %s5095_s11, %s3428_s15 }
  0x15   : > { %s381_s29 = scalar_select %p380_p10, %s4273_s21, 1  ;;  %vm422_vm0 = vcmask 261120   ;;  %v3959_v35 = vld [vmem:[%s5087_s3 + $0x8] sm:$0xff]   ;;  %v3961_v38 = vld [vmem:[%s5087_s3] sm:$0xff]   ;;  %vm865_vm1 = vcmask 64512   ;;  %vm955_vm2 = vcmask 523264  }
  0x16   : > { %v3960_v36 = vld [vmem:[%s5089_s5 + $0x8] sm:$0xff]   ;;  %3585 = vmatprep.subr.bf16.mxu0 %v3959_v35  ;;  %v3962_v39 = vld [vmem:[%s5089_s5] sm:$0xff]   ;;  %vm1688_vm3 = vcmask 1043456   ;;  %s4189_s21 = smov [#allocation2]  }
  0x17   : > { %s3427_s30 = sshll.u32 %s381_s29, 5  ;;  %3597 = vmatprep.subr.bf16.mxu1 %v3960_v36  ;;  %3586 = vmatpush3.bf16.msra.mxu0 %v3959_v35  ;;  %v4376_v40 = vld [vmem:[%s5091_s7 + $0x8] sm:$0xff]  }
  0x18   : > { %s384_s14 = scalar_lea.vmem %s5099_s0, %s3427_s30  ;;  %3598 = vmatpush3.bf16.msra.mxu1 %v3960_v36  ;;  %3587 = vmatprep.subr.bf16.mxu0 %v3961_v38  ;;  %s377_s30 = sand.u32 1, %s4179_s18  }
  0x19   : > { %v386_v0 = vld [vmem:[%s384_s14] sm:$0xff]  ;;  %v387_v1 = vld [vmem:[%s384_s14 + $0x8] sm:$0xff]  ;;  %v388_v2 = vld [vmem:[%s384_s14 + $0x10] sm:$0xff]  ;;  %3599 = vmatprep.subr.bf16.mxu1 %v3962_v39  ;;  %s3236_s12 = sshll.u32 %s377_s30, 5  ;;  %s5044_s25 = scalar_lea.sflag [#allocation3], %s377_s30 }
  0x1a   : > { %390 = vxpose.xlu0.b32.start [1/4] (short) (narrow) %v386_v0, 64  ;;  %v389_v3 = vld [vmem:[%s384_s14 + $0x18] sm:$0xff]  ;;  %s379_s13 = scalar_lea.vmem [#allocation2], %s3236_s12  ;;  %s4131_s12 = sshll.u32 %s4189_s21, 4  ;;  %s4132_s12 = int_to_ptr.vmem [resolvable:$false] %s4131_s12 }
  0x1b   : > { %3588 = vmatpush3.bf16.msra.mxu0 %v3961_v38  ;;  %s3170_s14 = sshll.u32 %s379_s13, 4  ;;  %s4133_s0 = scalar_lea.vmem %s4132_s12, 1024  ;;  %s5036_s14 = int_to_ptr.vmem [resolvable:$true] %s3170_s14 }
  0x1c   : > { %3600 = vmatpush3.bf16.msra.mxu1 %v3962_v39  ;;  %3609 = vmatprep.subr.bf16.mxu0 %v4376_v40  ;;  %s4127_s29 = scalar_lea.vmem %s5036_s14, 512  ;;  %p4134_p0 = scmp.lt.s32.totalorder %s5036_s14, %s4132_s12 }
  0x1d   : > { %p4128_p11 = scmp.ne.s32.totalorder %s5036_s14, %s4127_s29  ;;  %p4135_p1 = scmp.lt.s32.totalorder %s4133_s0, %s4127_s29 }
  0x1e   : > { %391 = vxpose.xlu0.b32.cont [2/4] (short) (narrow) %v387_v1, 64 }
  0x1f   : > { %p4129_p12 = pnand %p4128_p11, %p4290_p5  ;;  %p4136_p2 = por %p4135_p1, %p4134_p0 }
  0x21   : > { %p4130_p13 = pneg %p4129_p12 }
  0x22   : > { %392 = vxpose.xlu0.b32.cont [3/4] (short) (narrow) %v388_v2, 64 }
  0x23   : > { %p4137_p3 = pnand %p4136_p2, %p4130_p13 }
  0x26   : > { %393 = vxpose.xlu0.b32.end [4/4] (short) (narrow) %v389_v3, 64 }
  0x96   : > { %v4305_v4 = vpop.trf.xlu0 }
  0x97   : > { %v423_v5 = vsel %vm422_vm0, %v4305_v4, 0.0  ;;  %v447_v6 = vmul.f32 %v4305_v4, %v4305_v4 }
  0x98   : > { %424 = vadd.xlane.f32.xlu1 %v423_v5 }
  0x99   : > { %v455_v7 = vsel %vm422_vm0, %v447_v6, 0.0 }
  0x9a   : > { %456 = vadd.xlane.f32.xlu0 %v455_v7  ;;  %v4312_v8 = vpop.trf.xlu0  ;;  %v4383_v7 = vld [vmem:[%s5085_s1] ss:$0 sm:$0xff] }
  0x9b   : > { %v426_v9 = vsel %vm422_vm0, %v4312_v8, 0.0  ;;  %v448_v10 = vmul.f32 %v4312_v8, %v4312_v8 }
  0x9c   : > { %427 = vadd.xlane.f32.xlu1 %v426_v9 }
  0x9d   : > { %v458_v12 = vsel %vm422_vm0, %v448_v10, 0.0 }
  0x9e   : > { %v4318_v11 = vpop.trf.xlu0 }
  0x9f   : > { %v429_v13 = vsel %vm422_vm0, %v4318_v11, 0.0  ;;  %v449_v14 = vmul.f32 %v4318_v11, %v4318_v11 }
  0xa0   : > { %459 = vadd.xlane.f32.xlu1 %v458_v12 }
  0xa1   : > { %v461_v16 = vsel %vm422_vm0, %v449_v14, 0.0 }
  0xa2   : > { %v4325_v15 = vpop.trf.xlu0 }
  0xa3   : > { %v432_v17 = vsel %vm422_vm0, %v4325_v15, 0.0  ;;  %v450_v18 = vmul.f32 %v4325_v15, %v4325_v15 }
  0xa4   : > { %430 = vadd.xlane.f32.xlu1 %v429_v13 }
  0xa5   : > { %v464_v20 = vsel %vm422_vm0, %v450_v18, 0.0  ;;  %v4390_v18 = vld [vmem:[%s5086_s2] ss:$0 sm:$0xff] }
  0xa6   : > { %v4332_v19 = vpop.trf.xlu0 }
  0xa7   : > { %v435_v21 = vsel %vm422_vm0, %v4332_v19, 0.0  ;;  %v451_v22 = vmul.f32 %v4332_v19, %v4332_v19 }
  0xa8   : > { %462 = vadd.xlane.f32.xlu1 %v461_v16 }
  0xa9   : > { %v467_v24 = vsel %vm422_vm0, %v451_v22, 0.0 }
  0xaa   : > { %v4339_v23 = vpop.trf.xlu0 }
  0xab   : > { %v438_v25 = vsel %vm422_vm0, %v4339_v23, 0.0  ;;  %v452_v26 = vmul.f32 %v4339_v23, %v4339_v23 }
  0xac   : > { %433 = vadd.xlane.f32.xlu1 %v432_v17 }
  0xad   : > { %v470_v28 = vsel %vm422_vm0, %v452_v26, 0.0 }
  0xae   : > { %v4346_v27 = vpop.trf.xlu0 }
  0xaf   : > { %v441_v29 = vsel %vm422_vm0, %v4346_v27, 0.0  ;;  %v453_v30 = vmul.f32 %v4346_v27, %v4346_v27 }
  0xb0   : > { %465 = vadd.xlane.f32.xlu1 %v464_v20 }
  0xb1   : > { %v473_v32 = vsel %vm422_vm0, %v453_v30, 0.0 }
  0xb2   : > { %v4353_v31 = vpop.trf.xlu0 }
  0xb3   : > { %v444_v33 = vsel %vm422_vm0, %v4353_v31, 0.0  ;;  %v454_v34 = vmul.f32 %v4353_v31, %v4353_v31 }
  0xb4   : > { %436 = vadd.xlane.f32.xlu1 %v435_v21 }
  0xb5   : > { %v476_v37 = vsel %vm422_vm0, %v454_v34, 0.0 }
  0xb8   : > { %468 = vadd.xlane.f32.xlu1 %v467_v24 }
  0xbc   : > { %439 = vadd.xlane.f32.xlu1 %v438_v25 }
  0xc0   : > { %471 = vadd.xlane.f32.xlu1 %v470_v28 }
  0xc4   : > { %442 = vadd.xlane.f32.xlu1 %v441_v29 }
  0xc8   : > { %474 = vadd.xlane.f32.xlu1 %v473_v32 }
  0xcc   : > { %445 = vadd.xlane.f32.xlu1 %v444_v33 }
  0xd0   : > { %477 = vadd.xlane.f32.xlu1 %v476_v37 }
 0x121   : > { %v425_v41 = vpop.xlane.xlu1 %424 }
 0x122   : > { %v479_v42 = vmul.f32 0.03125, %v425_v41 }
 0x123   : > { %v457_v43 = vpop.xlane.xlu0 %456 }
 0x124   : > { %v495_v44 = vmul.f32 %v479_v42, %v479_v42  ;;  %v487_v45 = vmul.f32 0.03125, %v457_v43  ;;  %v527_v1 = vsub.f32 %v4305_v4, %v479_v42 }
 0x125   : > { %v428_v46 = vpop.xlane.xlu1 %427 }
 0x126   : > { %v503_v47 = vsub.f32 %v487_v45, %v495_v44  ;;  %v480_v48 = vmul.f32 0.03125, %v428_v46 }
 0x128   : > { %v511_v49 = vadd.f32 1e-05, %v503_v47  ;;  %v496_v51 = vmul.f32 %v480_v48, %v480_v48  ;;  %v528_v9 = vsub.f32 %v4312_v8, %v480_v48 }
 0x129   : > { %v460_v50 = vpop.xlane.xlu1 %459 }
 0x12a   : > { %3983 = vrsqrt.f32 %v511_v49  ;;  %v488_v52 = vmul.f32 0.03125, %v460_v50 }
 0x12c   : > { %v504_v53 = vsub.f32 %v488_v52, %v496_v51 }
 0x12d   : > { %v431_v54 = vpop.xlane.xlu1 %430 }
 0x12e   : > { %v512_v55 = vadd.f32 1e-05, %v504_v53  ;;  %v481_v56 = vmul.f32 0.03125, %v431_v54  ;;  %v3964_v54 = vld [vmem:[%s5091_s7] sm:$0xff]  }
 0x130   : > { %3985 = vrsqrt.f32 %v512_v55  ;;  %v497_v58 = vmul.f32 %v481_v56, %v481_v56  ;;  %v529_v34 = vsub.f32 %v4318_v11, %v481_v56 }
 0x131   : > { %v463_v57 = vpop.xlane.xlu1 %462 }
 0x132   : > { %v489_v59 = vmul.f32 0.03125, %v463_v57 }
 0x134   : > { %v505_v60 = vsub.f32 %v489_v59, %v497_v58 }
 0x135   : > { %v434_v61 = vpop.xlane.xlu1 %433 }
 0x136   : > { %v513_v62 = vadd.f32 1e-05, %v505_v60  ;;  %v482_v63 = vmul.f32 0.03125, %v434_v61 }
 0x137   : > { %v3984_v0 = vpop.eup %3983 }
 0x138   : > { %v535_v3 = vmul.f32 %v3984_v0, %v527_v1  ;;  %3987 = vrsqrt.f32 %v513_v62  ;;  %v498_v5 = vmul.f32 %v482_v63, %v482_v63  ;;  %v530_v39 = vsub.f32 %v4325_v15, %v482_v63 }
 0x139   : > { %v466_v2 = vpop.xlane.xlu1 %465 }
 0x13a   : > { %v490_v6 = vmul.f32 0.03125, %v466_v2  ;;  %v550_v14 = vmul.f32 %v4383_v7, %v535_v3 }
 0x13c   : > { %v506_v10 = vsub.f32 %v490_v6, %v498_v5  ;;  %v565_v22 = vadd.f32 %v4390_v18, %v550_v14 }
 0x13d   : > { %v3986_v12 = vpop.eup %3985  ;;  %v437_v13 = vpop.xlane.xlu1 %436 }
 0x13e   : > { %v536_v16 = vmul.f32 %v3986_v12, %v528_v9  ;;  %v514_v17 = vadd.f32 1e-05, %v506_v10  ;;  %v483_v4 = vmul.f32 0.03125, %v437_v13 }
 0x140   : > { %v551_v20 = vmul.f32 %v4383_v7, %v536_v16  ;;  %3989 = vrsqrt.f32 %v514_v17  ;;  %v499_v24 = vmul.f32 %v483_v4, %v483_v4  ;;  %v531_v59 = vsub.f32 %v4332_v19, %v483_v4 }
 0x141   : > { %v469_v21 = vpop.xlane.xlu1 %468 }
 0x142   : > { %v566_v8 = vadd.f32 %v4390_v18, %v551_v20  ;;  %v491_v25 = vmul.f32 0.03125, %v469_v21 }
 0x144   : > { %v4395_v26 = vpack.c.bf16 %v566_v8, %v565_v22  ;;  %v507_v28 = vsub.f32 %v491_v25, %v499_v24 }
 0x145   : > { %v440_v29 = vpop.xlane.xlu1 %439  ;;  %v3988_v33 = vpop.eup %3987 }
 0x146   : > { %v515_v30 = vadd.f32 1e-05, %v507_v28  ;;  %v484_v32 = vmul.f32 0.03125, %v440_v29  ;;  %3589 = vmatprep.mubr.msk.bf16.mxu0 %vm422_vm0, %v4395_v26  ;;  %3601 = vmatprep.mubr.msk.bf16.mxu1 %vm422_vm0, %v4395_v26  ;;  %v537_v36 = vmul.f32 %v3988_v33, %v529_v34 }
 0x148   : > { %3991 = vrsqrt.f32 %v515_v30  ;;  %v500_v37 = vmul.f32 %v484_v32, %v484_v32  ;;  %v552_v44 = vmul.f32 %v4383_v7, %v537_v36  ;;  %v532_v0 = vsub.f32 %v4339_v23, %v484_v32 }
 0x149   : > { %v472_v35 = vpop.xlane.xlu1 %471 }
 0x14a   : > { %v492_v38 = vmul.f32 0.03125, %v472_v35  ;;  %v567_v11 = vadd.f32 %v4390_v18, %v552_v44 }
 0x14c   : > { %v508_v41 = vsub.f32 %v492_v38, %v500_v37 }
 0x14d   : > { %v3990_v42 = vpop.eup %3989  ;;  %v443_v43 = vpop.xlane.xlu1 %442 }
 0x14e   : > { %v538_v45 = vmul.f32 %v3990_v42, %v530_v39  ;;  %v516_v46 = vadd.f32 1e-05, %v508_v41  ;;  %v485_v47 = vmul.f32 0.03125, %v443_v43  ;;  %v3248_v43 = vld [vmem:[%s5090_s6] ss:$0 sm:$0xff] }
 0x150   : > { %v553_v48 = vmul.f32 %v4383_v7, %v538_v45  ;;  %3993 = vrsqrt.f32 %v516_v46  ;;  %v501_v51 = vmul.f32 %v485_v47, %v485_v47  ;;  %v533_v12 = vsub.f32 %v4346_v27, %v485_v47 }
 0x151   : > { %v475_v49 = vpop.xlane.xlu1 %474 }
 0x152   : > { %v568_v50 = vadd.f32 %v4390_v18, %v553_v48  ;;  %v493_v52 = vmul.f32 0.03125, %v475_v49 }
 0x154   : > { %v4407_v53 = vpack.c.bf16 %v568_v50, %v567_v11  ;;  %v509_v15 = vsub.f32 %v493_v52, %v501_v51 }
 0x155   : > { %v446_v55 = vpop.xlane.xlu1 %445  ;;  %v3992_v58 = vpop.eup %3991 }
 0x156   : > { %v517_v56 = vadd.f32 1e-05, %v509_v15  ;;  %v486_v57 = vmul.f32 0.03125, %v446_v55  ;;  %3590 = vmatmul.mubr.msk.bf16.vlgmr.msra.gmra.mxu0 %vm422_vm0, %v4407_v53  ;;  %3602 = vmatmul.mubr.msk.bf16.vlgmr.msra.gmra.mxu1 %vm422_vm0, %v4407_v53  ;;  %v539_v61 = vmul.f32 %v3992_v58, %v531_v59 }
 0x157   : > { %3610 = vmatpush3.bf16.msra.mxu0 %v4376_v40 }
 0x158   : > { %3611 = vmatprep.subr.bf16.mxu0 %v3964_v54  ;;  %3995 = vrsqrt.f32 %v517_v56  ;;  %v502_v62 = vmul.f32 %v486_v57, %v486_v57  ;;  %v554_v3 = vmul.f32 %v4383_v7, %v539_v61  ;;  %v534_v14 = vsub.f32 %v4353_v31, %v486_v57  ;;  %v4452_v31 = vld [vmem:[%s5088_s4] ss:$0 sm:$0xff] }
 0x159   : > { %v478_v60 = vpop.xlane.xlu1 %477 }
 0x15a   : > { %v494_v63 = vmul.f32 0.03125, %v478_v60  ;;  %v569_v19 = vadd.f32 %v4390_v18, %v554_v3 }
 0x15b   : > { %3612 = vmatpush3.bf16.msra.mxu0 %v3964_v54 }
 0x15c   : > { %v510_v1 = vsub.f32 %v494_v63, %v502_v62 }
 0x15d   : > { %v3994_v2 = vpop.eup %3993 }
 0x15e   : > { %v540_v5 = vmul.f32 %v3994_v2, %v532_v0  ;;  %v518_v6 = vadd.f32 1e-05, %v510_v1  ;;  %v3255_v0 = vld [vmem:[%s5092_s8] ss:$0 sm:$0xff] }
 0x160   : > { %v555_v9 = vmul.f32 %v4383_v7, %v540_v5  ;;  %3997 = vrsqrt.f32 %v518_v6 }
 0x162   : > { %v570_v40 = vadd.f32 %v4390_v18, %v555_v9 }
 0x164   : > { %v4423_v10 = vpack.c.bf16 %v570_v40, %v569_v19 }
 0x165   : > { %v3996_v23 = vpop.eup %3995 }
 0x166   : > { %3593 = vmatprep.mubr.msk.bf16.mxu0 %vm422_vm0, %v4423_v10  ;;  %3605 = vmatprep.mubr.msk.bf16.mxu1 %vm422_vm0, %v4423_v10  ;;  %v541_v13 = vmul.f32 %v3996_v23, %v533_v12 }
 0x168   : > { %v556_v17 = vmul.f32 %v4383_v7, %v541_v13 }
 0x16a   : > { %v571_v21 = vadd.f32 %v4390_v18, %v556_v17 }
 0x16d   : > { %v3998_v16 = vpop.eup %3997 }
 0x16e   : > { %v542_v4 = vmul.f32 %v3998_v16, %v534_v14 }
 0x170   : > { %v557_v20 = vmul.f32 %v4383_v7, %v542_v4 }
 0x172   : > { %v572_v22 = vadd.f32 %v4390_v18, %v557_v20 }
 0x174   : > { %v4435_v8 = vpack.c.bf16 %v572_v22, %v571_v21  ;;  %v3965_v22 = vld [vmem:[%s5089_s5 + $0x18] sm:$0xff]  }
 0x176   : > { %3594 = vmatmul.mubr.msk.bf16.gmra.mxu0 %vm422_vm0, %v4435_v8  ;;  %3606 = vmatmul.mubr.msk.bf16.gmra.mxu1 %vm422_vm0, %v4435_v8 }
 0x177   : > { %3613 = vmatprep.mubr.msk.bf16.mxu0 %vm422_vm0, %v4395_v26 }
 0x17e   : > { %3614 = vmatmul.mubr.msk.bf16.vlgmr.msra.gmra.mxu0 %vm422_vm0, %v4407_v53 }
 0x17f   : > { %3617 = vmatprep.mubr.msk.bf16.mxu0 %vm422_vm0, %v4423_v10 }
 0x186   : > { %3618 = vmatmul.mubr.msk.bf16.gmra.mxu0 %vm422_vm0, %v4435_v8 }
 0x216   : > { %v3591_v27 = vpop.f32.mrf.mxu0  ;;  %v3603_v34 = vpop.f32.mrf.mxu1 }
 0x217   : > { %v4455_v24 = vadd.f32 %v3591_v27, %v4452_v31  ;;  %v747_v59 = vadd.f32 %v3603_v34, %v3248_v43 }
 0x218   : > { %v646_v7 = vpop.f32.mrf.mxu0  ;;  %v738_v35 = vpop.f32.mrf.mxu1 }
 0x219   : > { %v647_v29 = vadd.f32 %v4452_v31, %v646_v7  ;;  %v739_v9 = vadd.f32 %v3248_v43, %v738_v35 }
 0x21a   : > { %v3592_v18 = vpop.f32.mrf.mxu0  ;;  %v3604_v36 = vpop.f32.mrf.mxu1 }
 0x21b   : > { %v4458_v25 = vadd.f32 %v3592_v18, %v4452_v31  ;;  %v750_v57 = vadd.f32 %v3604_v36, %v3248_v43 }
 0x21c   : > { %v649_v28 = vpop.f32.mrf.mxu0  ;;  %v741_v37 = vpop.f32.mrf.mxu1 }
 0x21d   : > { %v678_v30 = vpack.c.bf16 %v4458_v25, %v4455_v24  ;;  %v650_v32 = vadd.f32 %v4452_v31, %v649_v28  ;;  %v770_v61 = vpack.c.bf16 %v750_v57, %v747_v59  ;;  %v742_v2 = vadd.f32 %v3248_v43, %v741_v37 }
 0x21f   : > { %v677_v33 = vpack.c.bf16 %v650_v32, %v647_v29  ;;  %v769_v12 = vpack.c.bf16 %v742_v2, %v739_v9  ;;  %v882_v16 = vsel %vm865_vm1, %v770_v61, 0  ;;  %v3966_v29 = vld [vmem:[%s5089_s5 + $0x10] sm:$0xff]  }
 0x221   : > { %3629 = vmatprep.mubr.msk.bf16.mxu1 %vm865_vm1, %v677_v33  ;;  %v879_v7 = vsel %vm865_vm1, %v769_v12, 0 }
 0x236   : > { %v4465_v38 = vpop.f32.mrf.mxu0  ;;  %v3607_v39 = vpop.f32.mrf.mxu1 }
 0x237   : > { %v763_v46 = vadd.f32 %v3607_v39, %v3248_v43  ;;  %v671_v34 = vadd.f32 %v4465_v38, %v4452_v31 }
 0x238   : > { %v662_v41 = vpop.f32.mrf.mxu0  ;;  %v754_v42 = vpop.f32.mrf.mxu1 }
 0x239   : > { %v755_v11 = vadd.f32 %v3248_v43, %v754_v42  ;;  %v663_v28 = vadd.f32 %v4452_v31, %v662_v41 }
 0x23a   : > { %v4470_v44 = vpop.f32.mrf.mxu0  ;;  %v3608_v45 = vpop.f32.mrf.mxu1 }
 0x23b   : > { %v766_v47 = vadd.f32 %v3608_v45, %v3248_v43  ;;  %v674_v33 = vadd.f32 %v4470_v44, %v4452_v31 }
 0x23c   : > { %v665_v48 = vpop.f32.mrf.mxu0  ;;  %v757_v49 = vpop.f32.mrf.mxu1 }
 0x23d   : > { %v772_v50 = vpack.c.bf16 %v766_v47, %v763_v46  ;;  %v758_v51 = vadd.f32 %v3248_v43, %v757_v49  ;;  %v666_v18 = vadd.f32 %v4452_v31, %v665_v48  ;;  %v680_v35 = vpack.c.bf16 %v674_v33, %v671_v34 }
 0x23e   : > { %v3615_v52 = vpop.f32.mrf.mxu0 }
 0x23f   : > { %v771_v15 = vpack.c.bf16 %v758_v51, %v755_v11  ;;  %3897 = vmatprep.subr.msk.bf16.mxu1 %vm865_vm1, %v772_v50  ;;  %v888_v54 = vsel %vm865_vm1, %v772_v50, 0  ;;  %v839_v17 = vadd.f32 %v3615_v52, %v3255_v0  ;;  %v679_v32 = vpack.c.bf16 %v666_v18, %v663_v28 }
 0x240   : > { %v830_v55 = vpop.f32.mrf.mxu0  ;;  %3622 = vmatpush3.bf16.xpose.msra.mxu1 %v888_v54  ;;  %v3287_v54 = vld [vmem:[%s5090_s6 + $0x1] ss:$0 sm:$0xff] }
 0x241   : > { %3898 = vmatprep.subr.msk.bf16.mxu1 %vm865_vm1, %v771_v15  ;;  %v885_v62 = vsel %vm865_vm1, %v771_v15, 0  ;;  %v831_v21 = vadd.f32 %v3255_v0, %v830_v55 }
 0x242   : > { %v3616_v56 = vpop.f32.mrf.mxu0 }
 0x243   : > { %v842_v13 = vadd.f32 %v3616_v56, %v3255_v0 }
 0x244   : > { %v833_v58 = vpop.f32.mrf.mxu0 }
 0x245   : > { %v862_v4 = vpack.c.bf16 %v842_v13, %v839_v17  ;;  %v834_v20 = vadd.f32 %v3255_v0, %v833_v58 }
 0x246   : > { %v3619_v60 = vpop.f32.mrf.mxu0 }
 0x247   : > { %v855_v3 = vadd.f32 %v3619_v60, %v3255_v0  ;;  %v861_v27 = vpack.c.bf16 %v834_v20, %v831_v21 }
 0x248   : > { %v846_v63 = vpop.f32.mrf.mxu0  ;;  %3624 = vmatpush3.bf16.xpose.msra.mxu1 %v885_v62 }
 0x249   : > { %3899 = vmatprep.subr.msk.bf16.mxu1 %vm865_vm1, %v770_v61  ;;  %v847_v19 = vadd.f32 %v3255_v0, %v846_v63 }
 0x24a   : > { %v3620_v1 = vpop.f32.mrf.mxu0 }
 0x24b   : > { %v858_v5 = vadd.f32 %v3620_v1, %v3255_v0 }
 0x24c   : > { %v849_v6 = vpop.f32.mrf.mxu0 }
 0x24d   : > { %v864_v40 = vpack.c.bf16 %v858_v5, %v855_v3  ;;  %v850_v23 = vadd.f32 %v3255_v0, %v849_v6  ;;  %v3967_v5 = vld [vmem:[%s5087_s3 + $0x18] sm:$0xff]  }
 0x24f   : > { %v863_v14 = vpack.c.bf16 %v850_v23, %v847_v19  ;;  %3637 = vmatprep.subr.bf16.mxu0 %v864_v40 }
 0x250   : > { %3626 = vmatpush3.bf16.xpose.msra.mxu1 %v882_v16  ;;  %3638 = vmatpush3.bf16.msra.mxu0 %v864_v40 }
 0x251   : > { %3900 = vmatprep.subr.msk.bf16.mxu1 %vm865_vm1, %v769_v12  ;;  %3639 = vmatprep.subr.bf16.mxu0 %v863_v14 }
 0x254   : > { %3640 = vmatpush3.bf16.msra.mxu0 %v863_v14 }
 0x255   : > { %3641 = vmatprep.subr.bf16.mxu0 %v862_v4 }
 0x258   : > { %3628 = vmatpush3.bf16.xpose.msra.mxu1 %v879_v7  ;;  %3642 = vmatpush3.bf16.msra.mxu0 %v862_v4 }
 0x259   : > { %3643 = vmatprep.subr.bf16.mxu0 %v861_v27  ;;  %3665 = vmatprep.subr.bf16.mxu1 %v3965_v22 }
 0x25c   : > { %3644 = vmatpush3.bf16.msra.mxu0 %v861_v27 }
 0x25d   : > { %3653 = vmatprep.subr.bf16.mxu0 %v3967_v5 }
 0x25f   : > { %3630 = vmatmul.mubr.msk.bf16.vlgmr.msra.gmra.mxu1 %vm865_vm1, %v678_v30 }
 0x260   : > { %3633 = vmatprep.mubr.msk.bf16.mxu1 %vm865_vm1, %v679_v32  ;;  %3666 = vmatpush3.bf16.msra.mxu1 %v3965_v22 }
 0x261   : > { %3667 = vmatprep.subr.bf16.mxu1 %v3966_v29 }
 0x264   : > { %3668 = vmatpush3.bf16.msra.mxu1 %v3966_v29 }
 0x267   : > { %3634 = vmatmul.mubr.msk.bf16.gmra.mxu1 %vm865_vm1, %v680_v35 }
 0x268   : > { %3669 = vmatprep.mubr.msk.bf16.mxu1 %vm422_vm0, %v4395_v26 }
 0x26f   : > { %3670 = vmatmul.mubr.msk.bf16.vlgmr.msra.gmra.mxu1 %vm422_vm0, %v4407_v53 }
 0x270   : > { %3673 = vmatprep.mubr.msk.bf16.mxu1 %vm422_vm0, %v4423_v10 }
 0x277   : > { %3674 = vmatmul.mubr.msk.bf16.gmra.mxu1 %vm422_vm0, %v4435_v8 }
 0x31f   : > { %v4509_v24 = vpop.f32.mrf.mxu1 }
 0x320   : > { %v962_v31 = vsel %vm955_vm2, %v4509_v24, -inf }
 0x321   : > { %963 = vmax.xlane.f32.xlu1 %v962_v31  ;;  %v924_v25 = vpop.f32.mrf.mxu1 }
 0x322   : > { %v956_v36 = vsel %vm955_vm2, %v924_v25, -inf }
 0x323   : > { %v4513_v30 = vpop.f32.mrf.mxu1 }
 0x324   : > { %v965_v43 = vsel %vm955_vm2, %v4513_v30, -inf }
 0x325   : > { %957 = vmax.xlane.f32.xlu1 %v956_v36  ;;  %v927_v37 = vpop.f32.mrf.mxu1 }
 0x326   : > { %v959_v39 = vsel %vm955_vm2, %v927_v37, -inf }
 0x327   : > { %v4516_v38 = vpop.f32.mrf.mxu1 }
 0x328   : > { %v974_v50 = vsel %vm955_vm2, %v4516_v38, -inf }
 0x329   : > { %960 = vmax.xlane.f32.xlu1 %v959_v39  ;;  %v4519_v41 = vpop.f32.mrf.mxu1 }
 0x32a   : > { %v968_v47 = vsel %vm955_vm2, %v4519_v41, -inf }
 0x32b   : > { %v4521_v42 = vpop.f32.mrf.mxu1 }
 0x32c   : > { %v977_v49 = vsel %vm955_vm2, %v4521_v42, -inf }
 0x32d   : > { %966 = vmax.xlane.f32.xlu1 %v965_v43  ;;  %v4525_v44 = vpop.f32.mrf.mxu1 }
 0x32e   : > { %v971_v45 = vsel %vm955_vm2, %v4525_v44, -inf }
 0x32f   : > { %v3671_v46 = vpop.f32.mrf.mxu1  ;;  %972 = vmax.xlane.f32.xlu0 %v971_v45 }
 0x330   : > { %v1292_v1 = vadd.f32 %v3671_v46, %v3287_v54 }
 0x331   : > { %969 = vmax.xlane.f32.xlu1 %v968_v47  ;;  %v1283_v48 = vpop.f32.mrf.mxu1 }
 0x332   : > { %v1284_v9 = vadd.f32 %v3287_v54, %v1283_v48 }
 0x333   : > { %v3672_v11 = vpop.f32.mrf.mxu1  ;;  %978 = vmax.xlane.f32.xlu0 %v977_v49  ;;  %v3969_v49 = vld [vmem:[%s5091_s7 + $0x18] sm:$0xff]  }
 0x334   : > { %v1295_v0 = vadd.f32 %v3672_v11, %v3287_v54 }
 0x335   : > { %975 = vmax.xlane.f32.xlu1 %v974_v50  ;;  %v1286_v51 = vpop.f32.mrf.mxu1 }
 0x336   : > { %v1315_v2 = vpack.c.bf16 %v1295_v0, %v1292_v1  ;;  %v1287_v6 = vadd.f32 %v3287_v54, %v1286_v51  ;;  %v3275_v0 = vld [vmem:[%s5088_s4 + $0x1] ss:$0 sm:$0xff] }
 0x337   : > { %v3675_v52 = vpop.f32.mrf.mxu1 }
 0x338   : > { %v1308_v56 = vadd.f32 %v3675_v52, %v3287_v54  ;;  %v1314_v19 = vpack.c.bf16 %v1287_v6, %v1284_v9  ;;  %v1428_v40 = vsel %vm865_vm1, %v1315_v2, 0  ;;  %v3970_v52 = vld [vmem:[%s5091_s7 + $0x10] sm:$0xff]  }
 0x339   : > { %v1299_v15 = vpop.f32.mrf.mxu1 }
 0x33a   : > { %v1300_v59 = vadd.f32 %v3287_v54, %v1299_v15  ;;  %v1425_v23 = vsel %vm865_vm1, %v1314_v19, 0 }
 0x33b   : > { %v3676_v55 = vpop.f32.mrf.mxu1 }
 0x33c   : > { %v1311_v57 = vadd.f32 %v3676_v55, %v3287_v54 }
 0x33d   : > { %v1302_v58 = vpop.f32.mrf.mxu1 }
 0x33e   : > { %v1317_v60 = vpack.c.bf16 %v1311_v57, %v1308_v56  ;;  %v1303_v61 = vadd.f32 %v3287_v54, %v1302_v58 }
 0x340   : > { %v1316_v62 = vpack.c.bf16 %v1303_v61, %v1300_v59  ;;  %3901 = vmatprep.subr.msk.bf16.mxu1 %vm865_vm1, %v1317_v60  ;;  %v1434_v63 = vsel %vm865_vm1, %v1317_v60, 0 }
 0x341   : > { %3690 = vmatpush3.bf16.xpose.msra.mxu1 %v1434_v63 }
 0x342   : > { %3902 = vmatprep.subr.msk.bf16.mxu1 %vm865_vm1, %v1316_v62  ;;  %v1431_v3 = vsel %vm865_vm1, %v1316_v62, 0 }
 0x349   : > { %3692 = vmatpush3.bf16.xpose.msra.mxu1 %v1431_v3 }
 0x34a   : > { %3903 = vmatprep.subr.msk.bf16.mxu1 %vm865_vm1, %v1315_v2 }
 0x351   : > { %3694 = vmatpush3.bf16.xpose.msra.mxu1 %v1428_v40 }
 0x352   : > { %3904 = vmatprep.subr.msk.bf16.mxu1 %vm865_vm1, %v1314_v19 }
 0x359   : > { %3696 = vmatpush3.bf16.xpose.msra.mxu1 %v1425_v23 }
 0x3aa   : > { %v964_v12 = vpop.xlane.xlu1 %963 }
 0x3ab   : > { %v982_v16 = vsub.f32 %v4509_v24, %v964_v12 }
 0x3ad   : > { %v992_v22 = vmul.f32 1.442695, %v982_v16 }
 0x3ae   : > { %v958_v13 = vpop.xlane.xlu1 %957 }
 0x3af   : > { %v980_v14 = vsub.f32 %v924_v25, %v958_v13 }
 0x3b1   : > { %v988_v17 = vmul.f32 1.442695, %v980_v14 }
 0x3b2   : > { %v961_v4 = vpop.xlane.xlu1 %960 }
 0x3b3   : > { %v981_v20 = vsub.f32 %v927_v37, %v961_v4  ;;  %3999 = vpow2.f32 %v988_v17 }
 0x3b5   : > { %v990_v21 = vmul.f32 1.442695, %v981_v20 }
 0x3b6   : > { %v967_v27 = vpop.xlane.xlu1 %966 }
 0x3b7   : > { %4001 = vpow2.f32 %v990_v21  ;;  %v983_v7 = vsub.f32 %v4513_v30, %v967_v27 }
 0x3b8   : > { %v973_v18 = vpop.xlane.xlu0 %972  ;;  %4003 = vpow2.f32 %v992_v22 }
 0x3b9   : > { %v994_v28 = vmul.f32 1.442695, %v983_v7  ;;  %v985_v29 = vsub.f32 %v4525_v44, %v973_v18 }
 0x3ba   : > { %v970_v32 = vpop.xlane.xlu1 %969 }
 0x3bb   : > { %4005 = vpow2.f32 %v994_v28  ;;  %v998_v33 = vmul.f32 1.442695, %v985_v29  ;;  %v984_v34 = vsub.f32 %v4519_v41, %v970_v32  ;;  %v3299_v32 = vld [vmem:[%s5092_s8 + $0x1] ss:$0 sm:$0xff] }
 0x3bc   : > { %v979_v35 = vpop.xlane.xlu0 %978 }
 0x3bd   : > { %v996_v24 = vmul.f32 1.442695, %v984_v34  ;;  %v987_v31 = vsub.f32 %v4521_v42, %v979_v35  ;;  %4007 = vpow2.f32 %v998_v33 }
 0x3be   : > { %v976_v25 = vpop.xlane.xlu1 %975 }
 0x3bf   : > { %4009 = vpow2.f32 %v996_v24  ;;  %v1002_v36 = vmul.f32 1.442695, %v987_v31  ;;  %v986_v30 = vsub.f32 %v4516_v38, %v976_v25  ;;  %v3968_v38 = vld [vmem:[%s5087_s3 + $0x10] sm:$0xff]  }
 0x3c0   : > { %v4555_v39 = vpop.eup %3999 }
 0x3c1   : > { %v1000_v37 = vmul.f32 1.442695, %v986_v30  ;;  %4011 = vpow2.f32 %v1002_v36 }
 0x3c3   : > { %4013 = vpow2.f32 %v1000_v37 }
 0x3c4   : > { %v4557_v43 = vpop.eup %4001 }
 0x3c5   : > { %v1028_v41 = vpack.c.bf16 %v4557_v43, %v4555_v39  ;;  %v4561_v44 = vpop.eup %4003 }
 0x3c7   : > { %3645 = vmatprep.mubr.msk.bf16.mxu0 %vm955_vm2, %v1028_v41 }
 0x3c8   : > { %v4564_v42 = vpop.eup %4005 }
 0x3c9   : > { %v1029_v45 = vpack.c.bf16 %v4564_v42, %v4561_v44 }
 0x3ca   : > { %v4571_v46 = vpop.eup %4007 }
 0x3cb   : > { %3646 = vmatmul.mubr.msk.bf16.vlgmr.msra.gmra.mxu0 %vm955_vm2, %v1029_v45 }
 0x3cc   : > { %v4574_v47 = vpop.eup %4009  ;;  %3654 = vmatpush3.bf16.msra.mxu0 %v3967_v5 }
 0x3cd   : > { %v1030_v48 = vpack.c.bf16 %v4571_v46, %v4574_v47  ;;  %3655 = vmatprep.subr.bf16.mxu0 %v3968_v38 }
 0x3ce   : > { %v4581_v11 = vpop.eup %4011 }
 0x3cf   : > { %3649 = vmatprep.mubr.msk.bf16.mxu0 %vm955_vm2, %v1030_v48 }
 0x3d0   : > { %v4584_v50 = vpop.eup %4013  ;;  %3656 = vmatpush3.bf16.msra.mxu0 %v3968_v38 }
 0x3d1   : > { %v1031_v51 = vpack.c.bf16 %v4581_v11, %v4584_v50  ;;  %3677 = vmatprep.subr.bf16.mxu0 %v3969_v49 }
 0x3d3   : > { %3650 = vmatmul.mubr.msk.bf16.gmra.mxu0 %vm955_vm2, %v1031_v51 }
 0x3d4   : > { %3657 = vmatprep.mubr.msk.bf16.mxu0 %vm422_vm0, %v4395_v26 }
 0x3db   : > { %3658 = vmatmul.mubr.msk.bf16.vlgmr.msra.gmra.mxu0 %vm422_vm0, %v4407_v53 }
 0x3dc   : > { %3661 = vmatprep.mubr.msk.bf16.mxu0 %vm422_vm0, %v4423_v10  ;;  %3678 = vmatpush3.bf16.msra.mxu0 %v3969_v49 }
 0x3dd   : > { %3679 = vmatprep.subr.bf16.mxu0 %v3970_v52 }
 0x3e0   : > { %3680 = vmatpush3.bf16.msra.mxu0 %v3970_v52 }
 0x3e3   : > { %3662 = vmatmul.mubr.msk.bf16.gmra.mxu0 %vm422_vm0, %v4435_v8 }
 0x3e4   : > { %3681 = vmatprep.mubr.msk.bf16.mxu0 %vm422_vm0, %v4395_v26 }
 0x3eb   : > { %3682 = vmatmul.mubr.msk.bf16.vlgmr.msra.gmra.mxu0 %vm422_vm0, %v4407_v53 }
 0x3ec   : > { %3685 = vmatprep.mubr.msk.bf16.mxu0 %vm422_vm0, %v4423_v10 }
 0x3f3   : > { %3686 = vmatmul.mubr.msk.bf16.gmra.mxu0 %vm422_vm0, %v4435_v8 }
 0x48b   : > { %v4608_v15 = vpop.f32.mrf.mxu0 }
 0x48d   : > { %v4610_v54 = vpop.f32.mrf.mxu0 }
 0x48f   : > { %v4612_v55 = vpop.f32.mrf.mxu0 }
 0x491   : > { %v4614_v56 = vpop.f32.mrf.mxu0 }
 0x493   : > { %v4616_v57 = vpop.f32.mrf.mxu0 }
 0x495   : > { %v4618_v58 = vpop.f32.mrf.mxu0 }
 0x497   : > { %v4620_v59 = vpop.f32.mrf.mxu0 }
 0x499   : > { %v4622_v60 = vpop.f32.mrf.mxu0 }
 0x49b   : > { %v3659_v61 = vpop.f32.mrf.mxu0 }
 0x49c   : > { %v1198_v6 = vadd.f32 %v3659_v61, %v3275_v0 }
 0x49d   : > { %v1189_v62 = vpop.f32.mrf.mxu0 }
 0x49e   : > { %v1190_v3 = vadd.f32 %v3275_v0, %v1189_v62 }
 0x49f   : > { %v3660_v63 = vpop.f32.mrf.mxu0 }
 0x4a0   : > { %v1201_v1 = vadd.f32 %v3660_v63, %v3275_v0 }
 0x4a1   : > { %v1192_v2 = vpop.f32.mrf.mxu0 }
 0x4a2   : > { %v1193_v5 = vadd.f32 %v3275_v0, %v1192_v2  ;;  %v1221_v40 = vpack.c.bf16 %v1201_v1, %v1198_v6 }
 0x4a3   : > { %v3663_v9 = vpop.f32.mrf.mxu0 }
 0x4a4   : > { %v1220_v19 = vpack.c.bf16 %v1193_v5, %v1190_v3  ;;  %v1214_v4 = vadd.f32 %v3663_v9, %v3275_v0 }
 0x4a5   : > { %v1205_v23 = vpop.f32.mrf.mxu0 }
 0x4a6   : > { %3697 = vmatprep.mubr.msk.bf16.mxu1 %vm865_vm1, %v1220_v19  ;;  %v1206_v16 = vadd.f32 %v3275_v0, %v1205_v23 }
 0x4a7   : > { %v3664_v12 = vpop.f32.mrf.mxu0  ;;  %3698 = vmatmul.mubr.msk.bf16.vlgmr.msra.gmra.mxu1 %vm865_vm1, %v1221_v40 }
 0x4a8   : > { %v1217_v13 = vadd.f32 %v3664_v12, %v3275_v0  ;;  %v1004_v12 = vsel %vm955_vm2, %v4555_v39, 0.0  ;;  %v1022_v39 = vsel %vm955_vm2, %v4584_v50, 0.0 }
 0x4a9   : > { %v1208_v14 = vpop.f32.mrf.mxu0 }
 0x4aa   : > { %v1209_v17 = vadd.f32 %v3275_v0, %v1208_v14  ;;  %v1223_v22 = vpack.c.bf16 %v1217_v13, %v1214_v4  ;;  %v1010_v14 = vsel %vm955_vm2, %v4561_v44, 0.0  ;;  %v1013_v4 = vsel %vm955_vm2, %v4564_v42, 0.0  ;;  %v1129_v44 = vld [vmem:[%s5093_s9] sm:$0xf] }
 0x4ab   : > { %v3683_v20 = vpop.f32.mrf.mxu0  ;;  %3906 = vmatprep.subr.msk.bf16.mxu1 %vm1688_vm3, %v1129_v44  ;;  %v1770_v42 = vsel %vm1688_vm3, %v1129_v44, 0 }
 0x4ac   : > { %v1222_v21 = vpack.c.bf16 %v1209_v17, %v1206_v16  ;;  %v1386_v41 = vadd.f32 %v3683_v20, %v3299_v32  ;;  %v1007_v16 = vsel %vm955_vm2, %v4557_v43, 0.0  ;;  %v1016_v17 = vsel %vm955_vm2, %v4574_v47, 0.0  ;;  %3732 = vmatpush3.bf16.msra.mxu1 %v1770_v42 }
 0x4ad   : > { %v1377_v27 = vpop.f32.mrf.mxu0  ;;  %v1019_v20 = vsel %vm955_vm2, %v4571_v46, 0.0  ;;  %v1025_v43 = vsel %vm955_vm2, %v4581_v11, 0.0  ;;  %v4669_v46 = vld [vmem:[%s5089_s5 + $0x28] sm:$0xff]  }
 0x4ae   : > { %3701 = vmatprep.mubr.msk.bf16.mxu1 %vm865_vm1, %v1222_v21  ;;  %v1378_v48 = vadd.f32 %v3299_v32, %v1377_v27  ;;  %3753 = vmatprep.subr.bf16.mxu1 %v4669_v46 }
 0x4af   : > { %v3684_v7 = vpop.f32.mrf.mxu0  ;;  %3702 = vmatmul.mubr.msk.bf16.gmra.mxu1 %vm865_vm1, %v1223_v22 }
 0x4b0   : > { %v1389_v30 = vadd.f32 %v3684_v7, %v3299_v32 }
 0x4b1   : > { %v1380_v18 = vpop.f32.mrf.mxu0 }
 0x4b2   : > { %v1409_v45 = vpack.c.bf16 %v1389_v30, %v1386_v41  ;;  %v1381_v38 = vadd.f32 %v3299_v32, %v1380_v18 }
 0x4b3   : > { %v3687_v28 = vpop.f32.mrf.mxu0 }
 0x4b4   : > { %v1402_v34 = vadd.f32 %v3687_v28, %v3299_v32  ;;  %v1408_v49 = vpack.c.bf16 %v1381_v38, %v1378_v48 }
 0x4b5   : > { %v1393_v29 = vpop.f32.mrf.mxu0 }
 0x4b6   : > { %v1394_v31 = vadd.f32 %v3299_v32, %v1393_v29 }
 0x4b7   : > { %v3688_v33 = vpop.f32.mrf.mxu0 }
 0x4b8   : > { %v1405_v35 = vadd.f32 %v3688_v33, %v3299_v32 }
 0x4b9   : > { %v1396_v24 = vpop.f32.mrf.mxu0 }
 0x4ba   : > { %v1411_v25 = vpack.c.bf16 %v1405_v35, %v1402_v34  ;;  %v1397_v36 = vadd.f32 %v3299_v32, %v1396_v24 }
 0x4bc   : > { %v1410_v37 = vpack.c.bf16 %v1397_v36, %v1394_v31  ;;  %3705 = vmatprep.subr.bf16.mxu0 %v1411_v25 }
 0x4bd   : > { %3706 = vmatpush3.bf16.msra.mxu0 %v1411_v25 }
 0x4be   : > { %3707 = vmatprep.subr.bf16.mxu0 %v1410_v37 }
 0x4c1   : > { %3708 = vmatpush3.bf16.msra.mxu0 %v1410_v37 }
 0x4c2   : > { %3709 = vmatprep.subr.bf16.mxu0 %v1409_v45 }
 0x4c5   : > { %3710 = vmatpush3.bf16.msra.mxu0 %v1409_v45 }
 0x4c6   : > { %3711 = vmatprep.subr.bf16.mxu0 %v1408_v49 }
 0x4c9   : > { %3712 = vmatpush3.bf16.msra.mxu0 %v1408_v49 }
 0x567   : > { %v3699_v51 = vpop.f32.mrf.mxu1 }
 0x568   : > { %v1507_v0 = vsel %vm955_vm2, %v3699_v51, -inf }
 0x569   : > { %v1470_v52 = vpop.f32.mrf.mxu1 }
 0x56a   : > { %v1501_v61 = vsel %vm955_vm2, %v1470_v52, -inf }
 0x56b   : > { %1502 = vmax.xlane.f32.xlu1 %v1501_v61  ;;  %v3700_v62 = vpop.f32.mrf.mxu1 }
 0x56c   : > { %v1510_v5 = vsel %vm955_vm2, %v3700_v62, -inf }
 0x56d   : > { %v1473_v63 = vpop.f32.mrf.mxu1 }
 0x56e   : > { %v1504_v1 = vsel %vm955_vm2, %v1473_v63, -inf }
 0x56f   : > { %1508 = vmax.xlane.f32.xlu1 %v1507_v0  ;;  %1505 = vmax.xlane.f32.xlu0 %v1504_v1  ;;  %v3703_v2 = vpop.f32.mrf.mxu1 }
 0x570   : > { %v1519_v40 = vsel %vm955_vm2, %v3703_v2, -inf }
 0x571   : > { %v1486_v3 = vpop.f32.mrf.mxu1 }
 0x572   : > { %v1513_v6 = vsel %vm955_vm2, %v1486_v3, -inf }
 0x573   : > { %1511 = vmax.xlane.f32.xlu0 %v1510_v5  ;;  %1514 = vmax.xlane.f32.xlu1 %v1513_v6  ;;  %v4639_v9 = vpop.f32.mrf.mxu1 }
 0x574   : > { %v1522_v13 = vsel %vm955_vm2, %v4639_v9, -inf }
 0x575   : > { %v1489_v19 = vpop.f32.mrf.mxu1 }
 0x576   : > { %v1516_v23 = vsel %vm955_vm2, %v1489_v19, -inf }
 0x577   : > { %1520 = vmax.xlane.f32.xlu1 %v1519_v40  ;;  %1517 = vmax.xlane.f32.xlu0 %v1516_v23 }
 0x57b   : > { %1005 = vadd.xlane.f32.xlu1 %v1004_v12  ;;  %1523 = vmax.xlane.f32.xlu0 %v1522_v13 }
 0x57f   : > { %1011 = vadd.xlane.f32.xlu1 %v1010_v14  ;;  %1008 = vadd.xlane.f32.xlu0 %v1007_v16 }
 0x583   : > { %1017 = vadd.xlane.f32.xlu1 %v1016_v17  ;;  %1014 = vadd.xlane.f32.xlu0 %v1013_v4 }
 0x587   : > { %1023 = vadd.xlane.f32.xlu1 %v1022_v39  ;;  %1020 = vadd.xlane.f32.xlu0 %v1019_v20 }
 0x58b   : > { %1026 = vadd.xlane.f32.xlu0 %v1025_v43 }
 0x5f4   : > { %v1503_v47 = vpop.xlane.xlu1 %1502 }
 0x5f5   : > { %v1525_v11 = vsub.f32 %v1470_v52, %v1503_v47 }
 0x5f7   : > { %v1533_v50 = vmul.f32 1.442695, %v1525_v11 }
 0x5f8   : > { %v1509_v21 = vpop.xlane.xlu1 %1508  ;;  %v1506_v22 = vpop.xlane.xlu0 %1505 }
 0x5f9   : > { %4015 = vpow2.f32 %v1533_v50  ;;  %v1527_v27 = vsub.f32 %v3699_v51, %v1509_v21  ;;  %v1526_v7 = vsub.f32 %v1473_v63, %v1506_v22 }
 0x5fb   : > { %v1537_v18 = vmul.f32 1.442695, %v1527_v27  ;;  %v1535_v28 = vmul.f32 1.442695, %v1526_v7 }
 0x5fc   : > { %v1512_v29 = vpop.xlane.xlu0 %1511  ;;  %v1515_v32 = vpop.xlane.xlu1 %1514 }
 0x5fd   : > { %4017 = vpow2.f32 %v1537_v18  ;;  %v1528_v33 = vsub.f32 %v3700_v62, %v1512_v29  ;;  %v1529_v34 = vsub.f32 %v1486_v3, %v1515_v32 }
 0x5fe   : > { %4019 = vpow2.f32 %v1535_v28 }
 0x5ff   : > { %v1539_v35 = vmul.f32 1.442695, %v1528_v33  ;;  %v1541_v24 = vmul.f32 1.442695, %v1529_v34  ;;  %v3972_v34 = vld [vmem:[%s5089_s5 + $0x20] sm:$0xff]  }
 0x600   : > { %v1521_v31 = vpop.xlane.xlu1 %1520  ;;  %v1518_v25 = vpop.xlane.xlu0 %1517 }
 0x601   : > { %4021 = vpow2.f32 %v1539_v35  ;;  %v1531_v36 = vsub.f32 %v3703_v2, %v1521_v31  ;;  %v1530_v30 = vsub.f32 %v1489_v19, %v1518_v25 }
 0x602   : > { %4023 = vpow2.f32 %v1541_v24 }
 0x603   : > { %v1545_v37 = vmul.f32 1.442695, %v1531_v36  ;;  %v1543_v41 = vmul.f32 1.442695, %v1530_v30  ;;  %v3314_v36 = vld [vmem:[%s5093_s9 + $0x4] sm:$0xf] }
 0x604   : > { %v1006_v45 = vpop.xlane.xlu1 %1005  ;;  %v1524_v38 = vpop.xlane.xlu0 %1523  ;;  %3905 = vmatprep.subr.msk.bf16.mxu0 %vm1688_vm3, %v3314_v36 }
 0x605   : > { %4025 = vpow2.f32 %v1545_v37  ;;  %v1532_v48 = vsub.f32 %v4639_v9, %v1524_v38 }
 0x606   : > { %v4016_v49 = vpop.eup %4015  ;;  %4027 = vpow2.f32 %v1543_v41 }
 0x607   : > { %v1547_v51 = vmul.f32 1.442695, %v1532_v48  ;;  %v1549_v52 = vsel %vm955_vm2, %v4016_v49, 0.0  ;;  %4029 = vrcp.f32 %v1006_v45 }
 0x608   : > { %1550 = vadd.xlane.f32.xlu1 %v1549_v52  ;;  %v1012_v61 = vpop.xlane.xlu1 %1011  ;;  %v1009_v62 = vpop.xlane.xlu0 %1008 }
 0x609   : > { %4031 = vpow2.f32 %v1547_v51 }
 0x60a   : > { %v4018_v63 = vpop.eup %4017  ;;  %4033 = vrcp.f32 %v1009_v62 }
 0x60b   : > { %v4020_v0 = vpop.eup %4019  ;;  %v1555_v1 = vsel %vm955_vm2, %v4018_v63, 0.0  ;;  %4035 = vrcp.f32 %v1012_v61 }
 0x60c   : > { %1556 = vadd.xlane.f32.xlu1 %v1555_v1  ;;  %v1018_v2 = vpop.xlane.xlu1 %1017  ;;  %v1015_v3 = vpop.xlane.xlu0 %1014  ;;  %v1552_v5 = vsel %vm955_vm2, %v4020_v0, 0.0  ;;  %v1573_v6 = vpack.c.bf16 %v4020_v0, %v4016_v49 }
 0x60d   : > { %1553 = vadd.xlane.f32.xlu0 %v1552_v5  ;;  %4037 = vrcp.f32 %v1015_v3 }
 0x60e   : > { %v4022_v9 = vpop.eup %4021  ;;  %3713 = vmatprep.mubr.msk.bf16.mxu0 %vm955_vm2, %v1573_v6  ;;  %4039 = vrcp.f32 %v1018_v2 }
 0x60f   : > { %v4024_v19 = vpop.eup %4023  ;;  %v1574_v40 = vpack.c.bf16 %v4022_v9, %v4018_v63  ;;  %v1558_v23 = vsel %vm955_vm2, %v4022_v9, 0.0 }
 0x610   : > { %v1561_v12 = vsel %vm955_vm2, %v4024_v19, 0.0  ;;  %v1024_v13 = vpop.xlane.xlu1 %1023  ;;  %v1021_v14 = vpop.xlane.xlu0 %1020 }
 0x611   : > { %1562 = vadd.xlane.f32.xlu1 %v1561_v12  ;;  %1559 = vadd.xlane.f32.xlu0 %v1558_v23  ;;  %4041 = vrcp.f32 %v1021_v14  ;;  %v3974_v12 = vld [vmem:[%s5087_s3 + $0x20] sm:$0xff]  }
 0x612   : > { %v4026_v16 = vpop.eup %4025  ;;  %3714 = vmatmul.mubr.msk.bf16.vlgmr.msra.gmra.mxu0 %vm955_vm2, %v1574_v40  ;;  %4043 = vrcp.f32 %v1024_v13 }
 0x613   : > { %v4028_v17 = vpop.eup %4027  ;;  %v1567_v4 = vsel %vm955_vm2, %v4026_v16, 0.0 }
 0x614   : > { %v1564_v39 = vsel %vm955_vm2, %v4028_v17, 0.0  ;;  %v1027_v20 = vpop.xlane.xlu0 %1026  ;;  %v1575_v43 = vpack.c.bf16 %v4028_v17, %v4024_v19  ;;  %v4030_v44 = vpop.eup %4029 }
 0x615   : > { %1568 = vadd.xlane.f32.xlu1 %v1567_v4  ;;  %1565 = vadd.xlane.f32.xlu0 %v1564_v39  ;;  %4045 = vrcp.f32 %v1027_v20  ;;  %v1117_v22 = vmul.f32 %v4030_v44, %v4610_v54 }
 0x616   : > { %v4032_v42 = vpop.eup %4031  ;;  %3717 = vmatprep.mubr.msk.bf16.mxu0 %vm955_vm2, %v1575_v43  ;;  %v3975_v43 = vld [vmem:[%s5091_s7 + $0x28] sm:$0xff]  }
 0x617   : > { %v1570_v47 = vsel %vm955_vm2, %v4032_v42, 0.0  ;;  %v1576_v11 = vpack.c.bf16 %v4032_v42, %v4026_v16  ;;  %v4034_v50 = vpop.eup %4033 }
 0x618   : > { %v4036_v21 = vpop.eup %4035  ;;  %v1118_v27 = vmul.f32 %v4034_v50, %v4614_v56 }
 0x619   : > { %1571 = vadd.xlane.f32.xlu0 %v1570_v47  ;;  %v1119_v28 = vmul.f32 %v4036_v21, %v4608_v15 }
 0x61a   : > { %3718 = vmatmul.mubr.msk.bf16.gmra.mxu0 %vm955_vm2, %v1576_v11  ;;  %v4038_v7 = vpop.eup %4037  ;;  %v1125_v18 = vpack.c.bf16 %v1118_v27, %v1117_v22 }
 0x61b   : > { %v1120_v29 = vmul.f32 %v4038_v7, %v4612_v55  ;;  %v4040_v32 = vpop.eup %4039 }
 0x61c   : > { %3733 = vmatprep.mubr.msk.bf16.mxu1 %vm865_vm1, %v1125_v18  ;;  %v1121_v56 = vmul.f32 %v4040_v32, %v4618_v58  ;;  %v1690_v58 = vsel %vm1688_vm3, %v3314_v36, 0  ;;  %v3976_v32 = vld [vmem:[%s5091_s7 + $0x20] sm:$0xff]  }
 0x61d   : > { %v1126_v33 = vpack.c.bf16 %v1120_v29, %v1119_v28  ;;  %3722 = vmatpush3.bf16.msra.mxu0 %v1690_v58 }
 0x61e   : > { %v4042_v35 = vpop.eup %4041 }
 0x61f   : > { %v4044_v54 = vpop.eup %4043  ;;  %3734 = vmatmul.mubr.msk.bf16.vlgmr.msra.gmra.mxu1 %vm865_vm1, %v1126_v33  ;;  %v1122_v24 = vmul.f32 %v4042_v35, %v4622_v60 }
 0x620   : > { %3754 = vmatpush3.bf16.msra.mxu1 %v4669_v46  ;;  %v1123_v31 = vmul.f32 %v4044_v54, %v4616_v57  ;;  %v3973_v57 = vld [vmem:[%s5087_s3 + $0x28] sm:$0xff]  }
 0x621   : > { %v1127_v55 = vpack.c.bf16 %v1122_v24, %v1121_v56  ;;  %3755 = vmatprep.subr.bf16.mxu1 %v3972_v34  ;;  %3741 = vmatprep.subr.bf16.mxu0 %v3973_v57 }
 0x622   : > { %v4046_v15 = vpop.eup %4045 }
 0x623   : > { %v1124_v25 = vmul.f32 %v4046_v15, %v4620_v59  ;;  %3737 = vmatprep.mubr.msk.bf16.mxu1 %vm865_vm1, %v1127_v55  ;;  %v3340_v55 = vld [vmem:[%s5090_s6 + $0x2] ss:$0 sm:$0xff] }
 0x624   : > { %3756 = vmatpush3.bf16.msra.mxu1 %v3972_v34 }
 0x625   : > { %v1128_v60 = vpack.c.bf16 %v1124_v25, %v1123_v31 }
 0x627   : > { %3738 = vmatmul.mubr.msk.bf16.gmra.mxu1 %vm865_vm1, %v1128_v60 }
 0x628   : > { %3757 = vmatprep.mubr.msk.bf16.mxu1 %vm422_vm0, %v4395_v26 }
 0x62f   : > { %3758 = vmatmul.mubr.msk.bf16.vlgmr.msra.gmra.mxu1 %vm422_vm0, %v4407_v53 }
 0x630   : > { %3761 = vmatprep.mubr.msk.bf16.mxu1 %vm422_vm0, %v4423_v10 }
 0x637   : > { %3762 = vmatmul.mubr.msk.bf16.gmra.mxu1 %vm422_vm0, %v4435_v8 }
 0x691   : > { %v1551_v46 = vpop.xlane.xlu1 %1550 }
 0x692   : > { %4047 = vrcp.f32 %v1551_v46 }
 0x695   : > { %v1557_v37 = vpop.xlane.xlu1 %1556 }
 0x696   : > { %v1554_v59 = vpop.xlane.xlu0 %1553 }
 0x69a   : > { %v1560_v30 = vpop.xlane.xlu0 %1559  ;;  %v1563_v45 = vpop.xlane.xlu1 %1562 }
 0x69b   : > { %4049 = vrcp.f32 %v1560_v30 }
 0x69c   : > { %4051 = vrcp.f32 %v1554_v59 }
 0x69d   : > { %4053 = vrcp.f32 %v1557_v37 }
 0x69e   : > { %v1566_v41 = vpop.xlane.xlu0 %1565  ;;  %4055 = vrcp.f32 %v1563_v45  ;;  %v1569_v48 = vpop.xlane.xlu1 %1568 }
 0x69f   : > { %v4048_v52 = vpop.eup %4047 }
 0x6a2   : > { %v1572_v38 = vpop.xlane.xlu0 %1571 }
 0x6a3   : > { %4057 = vrcp.f32 %v1572_v38 }
 0x6a4   : > { %4059 = vrcp.f32 %v1566_v41 }
 0x6a5   : > { %4061 = vrcp.f32 %v1569_v48 }
 0x6a8   : > { %v4050_v62 = vpop.eup %4049 }
 0x6a9   : > { %v4052_v63 = vpop.eup %4051 }
 0x6aa   : > { %v4054_v2 = vpop.eup %4053 }
 0x6ab   : > { %v4056_v13 = vpop.eup %4055 }
 0x6b0   : > { %v4058_v16 = vpop.eup %4057 }
 0x6b1   : > { %v4060_v17 = vpop.eup %4059 }
 0x6b2   : > { %v4062_v44 = vpop.eup %4061 }
 0x6d2   : > { %v3715_v49 = vpop.f32.mrf.mxu0 }
 0x6d3   : > { %v1664_v6 = vmul.f32 %v4054_v2, %v3715_v49 }
 0x6d4   : > { %v1623_v51 = vpop.f32.mrf.mxu0 }
 0x6d5   : > { %v1662_v3 = vmul.f32 %v4048_v52, %v1623_v51 }
 0x6d6   : > { %v3716_v61 = vpop.f32.mrf.mxu0 }
 0x6d7   : > { %v1665_v0 = vmul.f32 %v4050_v62, %v3716_v61  ;;  %v3977_v62 = vld [vmem:[%s5087_s3 + $0x38] sm:$0xff]  }
 0x6d8   : > { %v1626_v1 = vpop.f32.mrf.mxu0 }
 0x6d9   : > { %v1663_v5 = vmul.f32 %v4052_v63, %v1626_v1  ;;  %v1671_v40 = vpack.c.bf16 %v1665_v0, %v1664_v6 }
 0x6da   : > { %v3719_v9 = vpop.f32.mrf.mxu0 }
 0x6db   : > { %v1670_v19 = vpack.c.bf16 %v1663_v5, %v1662_v3  ;;  %v1668_v11 = vmul.f32 %v4062_v44, %v3719_v9 }
 0x6dc   : > { %v1639_v23 = vpop.f32.mrf.mxu0 }
 0x6dd   : > { %3723 = vmatprep.mubr.msk.bf16.mxu0 %vm865_vm1, %v1670_v19  ;;  %v1666_v42 = vmul.f32 %v4056_v13, %v1639_v23 }
 0x6de   : > { %v3720_v14 = vpop.f32.mrf.mxu0  ;;  %3724 = vmatmul.mubr.msk.bf16.vlgmr.msra.gmra.mxu0 %vm865_vm1, %v1671_v40 }
 0x6df   : > { %3742 = vmatpush3.bf16.msra.mxu0 %v3973_v57  ;;  %v1669_v4 = vmul.f32 %v4058_v16, %v3720_v14  ;;  %v4722_v20 = vpop.f32.mrf.mxu1 }
 0x6e0   : > { %v1642_v39 = vpop.f32.mrf.mxu0  ;;  %3743 = vmatprep.subr.bf16.mxu0 %v3974_v12 }
 0x6e1   : > { %v1667_v47 = vmul.f32 %v4060_v17, %v1642_v39  ;;  %v4727_v50 = vpop.f32.mrf.mxu1  ;;  %v1673_v22 = vpack.c.bf16 %v1669_v4, %v1668_v11 }
 0x6e3   : > { %v1672_v21 = vpack.c.bf16 %v1667_v47, %v1666_v42  ;;  %3744 = vmatpush3.bf16.msra.mxu0 %v3974_v12  ;;  %v4729_v27 = vpop.f32.mrf.mxu1  ;;  %v3328_v12 = vld [vmem:[%s5088_s4 + $0x2] ss:$0 sm:$0xff]  ;;  %v3978_v47 = vld [vmem:[%s5087_s3 + $0x30] sm:$0xff]  }
 0x6e4   : > { %3765 = vmatprep.subr.bf16.mxu0 %v3975_v43 }
 0x6e5   : > { %3727 = vmatprep.mubr.msk.bf16.mxu0 %vm865_vm1, %v1672_v21  ;;  %v4733_v7 = vpop.f32.mrf.mxu1 }
 0x6e6   : > { %3728 = vmatmul.mubr.msk.bf16.gmra.mxu0 %vm865_vm1, %v1673_v22 }
 0x6e7   : > { %3745 = vmatprep.mubr.msk.bf16.mxu0 %vm422_vm0, %v4395_v26  ;;  %v4737_v18 = vpop.f32.mrf.mxu1 }
 0x6e9   : > { %v4739_v28 = vpop.f32.mrf.mxu1 }
 0x6eb   : > { %v4741_v29 = vpop.f32.mrf.mxu1 }
 0x6ed   : > { %v4746_v33 = vpop.f32.mrf.mxu1 }
 0x6ee   : > { %3746 = vmatmul.mubr.msk.bf16.vlgmr.msra.gmra.mxu0 %vm422_vm0, %v4407_v53 }
 0x6ef   : > { %3749 = vmatprep.mubr.msk.bf16.mxu0 %vm422_vm0, %v4423_v10  ;;  %3766 = vmatpush3.bf16.msra.mxu0 %v3975_v43  ;;  %v3759_v34 = vpop.f32.mrf.mxu1 }
 0x6f0   : > { %3767 = vmatprep.subr.bf16.mxu0 %v3976_v32  ;;  %v1999_v41 = vadd.f32 %v3759_v34, %v3340_v55 }
 0x6f1   : > { %v1990_v35 = vpop.f32.mrf.mxu1 }
 0x6f2   : > { %v1991_v49 = vadd.f32 %v3340_v55, %v1990_v35 }
 0x6f3   : > { %3768 = vmatpush3.bf16.msra.mxu0 %v3976_v32  ;;  %v3760_v54 = vpop.f32.mrf.mxu1  ;;  %v3979_v32 = vld [vmem:[%s5091_s7 + $0x38] sm:$0xff]  }
 0x6f4   : > { %v2002_v37 = vadd.f32 %v3760_v54, %v3340_v55 }
 0x6f5   : > { %v1993_v56 = vpop.f32.mrf.mxu1 }
 0x6f6   : > { %3750 = vmatmul.mubr.msk.bf16.gmra.mxu0 %vm422_vm0, %v4435_v8  ;;  %v2022_v45 = vpack.c.bf16 %v2002_v37, %v1999_v41  ;;  %v1994_v48 = vadd.f32 %v3340_v55, %v1993_v56 }
 0x6f7   : > { %3769 = vmatprep.mubr.msk.bf16.mxu0 %vm422_vm0, %v4395_v26  ;;  %v3763_v24 = vpop.f32.mrf.mxu1 }
 0x6f8   : > { %v2015_v25 = vadd.f32 %v3763_v24, %v3340_v55  ;;  %v2021_v51 = vpack.c.bf16 %v1994_v48, %v1991_v49  ;;  %v2135_v52 = vsel %vm865_vm1, %v2022_v45, 0 }
 0x6f9   : > { %v2006_v15 = vpop.f32.mrf.mxu1 }
 0x6fa   : > { %v2007_v60 = vadd.f32 %v3340_v55, %v2006_v15  ;;  %v2132_v61 = vsel %vm865_vm1, %v2021_v51, 0 }
 0x6fb   : > { %v3764_v31 = vpop.f32.mrf.mxu1 }
 0x6fc   : > { %v2018_v36 = vadd.f32 %v3764_v31, %v3340_v55 }
 0x6fd   : > { %v2009_v58 = vpop.f32.mrf.mxu1 }
 0x6fe   : > { %3770 = vmatmul.mubr.msk.bf16.vlgmr.msra.gmra.mxu0 %vm422_vm0, %v4407_v53  ;;  %v2024_v57 = vpack.c.bf16 %v2018_v36, %v2015_v25  ;;  %v2010_v59 = vadd.f32 %v3340_v55, %v2009_v58 }
 0x6ff   : > { %3773 = vmatprep.mubr.msk.bf16.mxu0 %vm422_vm0, %v4423_v10 }
 0x700   : > { %v2023_v46 = vpack.c.bf16 %v2010_v59, %v2007_v60  ;;  %3907 = vmatprep.subr.msk.bf16.mxu1 %vm865_vm1, %v2024_v57  ;;  %v2141_v30 = vsel %vm865_vm1, %v2024_v57, 0  ;;  %v3980_v60 = vld [vmem:[%s5091_s7 + $0x30] sm:$0xff]   ;;  %v3352_v57 = vld [vmem:[%s5092_s8 + $0x2] ss:$0 sm:$0xff] }
 0x701   : > { %3778 = vmatpush3.bf16.xpose.msra.mxu1 %v2141_v30 }
 0x702   : > { %3908 = vmatprep.subr.msk.bf16.mxu1 %vm865_vm1, %v2023_v46  ;;  %v2138_v38 = vsel %vm865_vm1, %v2023_v46, 0 }
 0x706   : > { %3774 = vmatmul.mubr.msk.bf16.gmra.mxu0 %vm422_vm0, %v4435_v8 }
 0x709   : > { %3780 = vmatpush3.bf16.xpose.msra.mxu1 %v2138_v38 }
 0x70a   : > { %3909 = vmatprep.subr.msk.bf16.mxu1 %vm865_vm1, %v2022_v45 }
 0x711   : > { %3782 = vmatpush3.bf16.xpose.msra.mxu1 %v2135_v52 }
 0x712   : > { %3910 = vmatprep.subr.msk.bf16.mxu1 %vm865_vm1, %v2021_v51 }
 0x719   : > { %3784 = vmatpush3.bf16.xpose.msra.mxu1 %v2132_v61 }
 0x71a   : > { %3819 = vmatprep.subr.bf16.mxu1 %v3977_v62 }
 0x79e   : > { %v4776_v63 = vpop.f32.mrf.mxu0 }
 0x7a0   : > { %v4778_v0 = vpop.f32.mrf.mxu0 }
 0x7a2   : > { %v4780_v1 = vpop.f32.mrf.mxu0 }
 0x7a4   : > { %v4782_v2 = vpop.f32.mrf.mxu0 }
 0x7a6   : > { %v4784_v3 = vpop.f32.mrf.mxu0 }
 0x7a8   : > { %v4786_v5 = vpop.f32.mrf.mxu0 }
 0x7aa   : > { %v4788_v6 = vpop.f32.mrf.mxu0 }
 0x7ac   : > { %v4790_v9 = vpop.f32.mrf.mxu0 }
 0x7ae   : > { %v3747_v19 = vpop.f32.mrf.mxu0 }
 0x7af   : > { %v1905_v4 = vadd.f32 %v3747_v19, %v3328_v12 }
 0x7b0   : > { %v1896_v40 = vpop.f32.mrf.mxu0 }
 0x7b1   : > { %v1897_v16 = vadd.f32 %v3328_v12, %v1896_v40 }
 0x7b2   : > { %v3748_v23 = vpop.f32.mrf.mxu0 }
 0x7b3   : > { %v1908_v13 = vadd.f32 %v3748_v23, %v3328_v12 }
 0x7b4   : > { %v1899_v14 = vpop.f32.mrf.mxu0 }
 0x7b5   : > { %v1900_v17 = vadd.f32 %v3328_v12, %v1899_v14  ;;  %v1928_v44 = vpack.c.bf16 %v1908_v13, %v1905_v4 }
 0x7b6   : > { %v3751_v39 = vpop.f32.mrf.mxu0 }
 0x7b7   : > { %v1927_v43 = vpack.c.bf16 %v1900_v17, %v1897_v16  ;;  %v1921_v54 = vadd.f32 %v3751_v39, %v3328_v12 }
 0x7b8   : > { %v1912_v42 = vpop.f32.mrf.mxu0 }
 0x7b9   : > { %3785 = vmatprep.mubr.msk.bf16.mxu1 %vm865_vm1, %v1927_v43  ;;  %v1913_v34 = vadd.f32 %v3328_v12, %v1912_v42 }
 0x7ba   : > { %v3752_v11 = vpop.f32.mrf.mxu0  ;;  %3786 = vmatmul.mubr.msk.bf16.vlgmr.msra.gmra.mxu1 %vm865_vm1, %v1928_v44 }
 0x7bb   : > { %3820 = vmatpush3.bf16.msra.mxu1 %v3977_v62  ;;  %v1924_v21 = vadd.f32 %v3752_v11, %v3328_v12  ;;  %v3377_v11 = vld [vmem:[%s5088_s4 + $0x3] ss:$0 sm:$0xff] }
 0x7bc   : > { %v1915_v22 = vpop.f32.mrf.mxu0  ;;  %3821 = vmatprep.subr.bf16.mxu1 %v3978_v47 }
 0x7bd   : > { %v1916_v35 = vadd.f32 %v3328_v12, %v1915_v22  ;;  %v1930_v15 = vpack.c.bf16 %v1924_v21, %v1921_v54 }
 0x7be   : > { %v3771_v56 = vpop.f32.mrf.mxu0 }
 0x7bf   : > { %v1929_v24 = vpack.c.bf16 %v1916_v35, %v1913_v34  ;;  %3822 = vmatpush3.bf16.msra.mxu1 %v3978_v47  ;;  %v2093_v51 = vadd.f32 %v3771_v56, %v3352_v57 }
 0x7c0   : > { %v2084_v55 = vpop.f32.mrf.mxu0  ;;  %3843 = vmatprep.subr.bf16.mxu1 %v3979_v32 }
 0x7c1   : > { %3789 = vmatprep.mubr.msk.bf16.mxu1 %vm865_vm1, %v1929_v24  ;;  %v2085_v62 = vadd.f32 %v3352_v57, %v2084_v55 }
 0x7c2   : > { %v3772_v31 = vpop.f32.mrf.mxu0  ;;  %3790 = vmatmul.mubr.msk.bf16.gmra.mxu1 %vm865_vm1, %v1930_v15 }
 0x7c3   : > { %3823 = vmatprep.mubr.msk.bf16.mxu1 %vm422_vm0, %v4395_v26  ;;  %v2096_v48 = vadd.f32 %v3772_v31, %v3352_v57 }
 0x7c4   : > { %v2087_v25 = vpop.f32.mrf.mxu0 }
 0x7c5   : > { %v2116_v52 = vpack.c.bf16 %v2096_v48, %v2093_v51  ;;  %v2088_v61 = vadd.f32 %v3352_v57, %v2087_v25 }
 0x7c6   : > { %v3775_v36 = vpop.f32.mrf.mxu0 }
 0x7c7   : > { %v2109_v46 = vadd.f32 %v3775_v36, %v3352_v57  ;;  %v2115_v19 = vpack.c.bf16 %v2088_v61, %v2085_v62 }
 0x7c8   : > { %v2100_v58 = vpop.f32.mrf.mxu0 }
 0x7c9   : > { %v2101_v41 = vadd.f32 %v3352_v57, %v2100_v58 }
 0x7ca   : > { %v3776_v59 = vpop.f32.mrf.mxu0  ;;  %3824 = vmatmul.mubr.msk.bf16.vlgmr.msra.gmra.mxu1 %vm422_vm0, %v4407_v53 }
 0x7cb   : > { %v2112_v30 = vadd.f32 %v3776_v59, %v3352_v57  ;;  %3827 = vmatprep.mubr.msk.bf16.mxu1 %vm422_vm0, %v4423_v10  ;;  %3844 = vmatpush3.bf16.msra.mxu1 %v3979_v32 }
 0x7cc   : > { %v2103_v37 = vpop.f32.mrf.mxu0  ;;  %3845 = vmatprep.subr.bf16.mxu1 %v3980_v60 }
 0x7cd   : > { %v2118_v45 = vpack.c.bf16 %v2112_v30, %v2109_v46  ;;  %v2104_v38 = vadd.f32 %v3352_v57, %v2103_v37 }
 0x7cf   : > { %v2117_v49 = vpack.c.bf16 %v2104_v38, %v2101_v41  ;;  %3793 = vmatprep.subr.bf16.mxu0 %v2118_v45  ;;  %3846 = vmatpush3.bf16.msra.mxu1 %v3980_v60 }
 0x7d0   : > { %3794 = vmatpush3.bf16.msra.mxu0 %v2118_v45 }
 0x7d1   : > { %3795 = vmatprep.subr.bf16.mxu0 %v2117_v49 }
 0x7d2   : > { %3828 = vmatmul.mubr.msk.bf16.gmra.mxu1 %vm422_vm0, %v4435_v8 }
 0x7d3   : > { %3847 = vmatprep.mubr.msk.bf16.mxu1 %vm422_vm0, %v4395_v26 }
 0x7d4   : > { %3796 = vmatpush3.bf16.msra.mxu0 %v2117_v49 }
 0x7d5   : > { %3797 = vmatprep.subr.bf16.mxu0 %v2116_v52 }
 0x7d8   : > { %3798 = vmatpush3.bf16.msra.mxu0 %v2116_v52 }
 0x7d9   : > { %3799 = vmatprep.subr.bf16.mxu0 %v2115_v19 }
 0x7da   : > { %3848 = vmatmul.mubr.msk.bf16.vlgmr.msra.gmra.mxu1 %vm422_vm0, %v4407_v53 }
 0x7db   : > { %3851 = vmatprep.mubr.msk.bf16.mxu1 %vm422_vm0, %v4423_v10 }
 0x7dc   : > { %3800 = vmatpush3.bf16.msra.mxu0 %v2115_v19  ;;  %v3401_v19 = vld [vmem:[%s5092_s8 + $0x3] ss:$0 sm:$0xff] }
 0x7e2   : > { %3852 = vmatmul.mubr.msk.bf16.gmra.mxu1 %vm422_vm0, %v4435_v8 }
 0x87a   : > { %v4827_v40 = vpop.f32.mrf.mxu1 }
 0x87b   : > { %v2214_v16 = vsel %vm955_vm2, %v4827_v40, -inf }
 0x87c   : > { %v4829_v23 = vpop.f32.mrf.mxu1 }
 0x87d   : > { %v2208_v12 = vsel %vm955_vm2, %v4829_v23, -inf }
 0x87e   : > { %2209 = vmax.xlane.f32.xlu1 %v2208_v12  ;;  %v4833_v13 = vpop.f32.mrf.mxu1 }
 0x87f   : > { %v2217_v43 = vsel %vm955_vm2, %v4833_v13, -inf }
 0x880   : > { %v4835_v14 = vpop.f32.mrf.mxu1 }
 0x881   : > { %v2211_v17 = vsel %vm955_vm2, %v4835_v14, -inf }
 0x882   : > { %2215 = vmax.xlane.f32.xlu1 %v2214_v16  ;;  %2212 = vmax.xlane.f32.xlu0 %v2211_v17  ;;  %v4841_v4 = vpop.f32.mrf.mxu1 }
 0x883   : > { %v2226_v21 = vsel %vm955_vm2, %v4841_v4, -inf }
 0x884   : > { %v4843_v39 = vpop.f32.mrf.mxu1 }
 0x885   : > { %v2220_v44 = vsel %vm955_vm2, %v4843_v39, -inf }
 0x886   : > { %2218 = vmax.xlane.f32.xlu0 %v2217_v43  ;;  %2221 = vmax.xlane.f32.xlu1 %v2220_v44  ;;  %v4849_v42 = vpop.f32.mrf.mxu1 }
 0x887   : > { %v2229_v54 = vsel %vm955_vm2, %v4849_v42, -inf }
 0x888   : > { %v4851_v47 = vpop.f32.mrf.mxu1 }
 0x889   : > { %v2223_v22 = vsel %vm955_vm2, %v4851_v47, -inf }
 0x88a   : > { %2227 = vmax.xlane.f32.xlu1 %v2226_v21  ;;  %v3825_v32 = vpop.f32.mrf.mxu1  ;;  %2224 = vmax.xlane.f32.xlu0 %v2223_v22 }
 0x88b   : > { %v4860_v34 = vadd.f32 %v3825_v32, %v3377_v11 }
 0x88c   : > { %v2530_v35 = vpop.f32.mrf.mxu1 }
 0x88d   : > { %v4866_v55 = vadd.f32 %v3377_v11, %v2530_v35 }
 0x88e   : > { %v3826_v56 = vpop.f32.mrf.mxu1  ;;  %2230 = vmax.xlane.f32.xlu0 %v2229_v54 }
 0x88f   : > { %v4864_v24 = vadd.f32 %v3826_v56, %v3377_v11 }
 0x890   : > { %v2533_v15 = vpop.f32.mrf.mxu1 }
 0x891   : > { %v2562_v31 = vpack.c.bf16 %v4864_v24, %v4860_v34  ;;  %v4870_v25 = vadd.f32 %v3377_v11, %v2533_v15 }
 0x892   : > { %v3829_v36 = vpop.f32.mrf.mxu1 }
 0x893   : > { %v2561_v58 = vpack.c.bf16 %v4870_v25, %v4866_v55  ;;  %v4874_v60 = vadd.f32 %v3829_v36, %v3377_v11  ;;  %v1810_v55 = vadd.f32 %v4733_v7, %v4782_v2  ;;  %v1826_v2 = vadd.f32 %v4746_v33, %v4790_v9 }
 0x894   : > { %v2546_v57 = vpop.f32.mrf.mxu1 }
 0x895   : > { %v4876_v59 = vadd.f32 %v3377_v11, %v2546_v57 }
 0x896   : > { %v3830_v46 = vpop.f32.mrf.mxu1 }
 0x897   : > { %v4878_v30 = vadd.f32 %v3830_v46, %v3377_v11 }
 0x898   : > { %v2549_v37 = vpop.f32.mrf.mxu1 }
 0x899   : > { %v2564_v41 = vpack.c.bf16 %v4878_v30, %v4874_v60  ;;  %v4882_v45 = vadd.f32 %v3377_v11, %v2549_v37 }
 0x89a   : > { %v3849_v38 = vpop.f32.mrf.mxu1 }
 0x89b   : > { %v2563_v48 = vpack.c.bf16 %v4882_v45, %v4876_v59  ;;  %v2727_v35 = vadd.f32 %v3849_v38, %v3401_v19 }
 0x89c   : > { %v2718_v49 = vpop.f32.mrf.mxu1 }
 0x89d   : > { %v2719_v15 = vadd.f32 %v3401_v19, %v2718_v49 }
 0x89e   : > { %v3850_v51 = vpop.f32.mrf.mxu1 }
 0x89f   : > { %v2730_v22 = vadd.f32 %v3850_v51, %v3401_v19 }
 0x8a0   : > { %v2721_v52 = vpop.f32.mrf.mxu1 }
 0x8a1   : > { %v2750_v54 = vpack.c.bf16 %v2730_v22, %v2727_v35  ;;  %v2722_v56 = vadd.f32 %v3401_v19, %v2721_v52 }
 0x8a2   : > { %v3853_v61 = vpop.f32.mrf.mxu1 }
 0x8a3   : > { %v2743_v16 = vadd.f32 %v3853_v61, %v3401_v19  ;;  %v2749_v36 = vpack.c.bf16 %v2722_v56, %v2719_v15 }
 0x8a4   : > { %v2734_v62 = vpop.f32.mrf.mxu1 }
 0x8a5   : > { %v2735_v44 = vadd.f32 %v3401_v19, %v2734_v62 }
 0x8a6   : > { %v3854_v12 = vpop.f32.mrf.mxu1 }
 0x8a7   : > { %v2746_v17 = vadd.f32 %v3854_v12, %v3401_v19 }
 0x8a8   : > { %v2737_v43 = vpop.f32.mrf.mxu1 }
 0x8a9   : > { %v2752_v11 = vpack.c.bf16 %v2746_v17, %v2743_v16  ;;  %v2738_v21 = vadd.f32 %v3401_v19, %v2737_v43 }
 0x8ab   : > { %v2751_v32 = vpack.c.bf16 %v2738_v21, %v2735_v44  ;;  %3871 = vmatprep.subr.bf16.mxu1 %v2752_v11 }
 0x8ac   : > { %3872 = vmatpush3.bf16.msra.mxu1 %v2752_v11 }
 0x8ad   : > { %3873 = vmatprep.subr.bf16.mxu1 %v2751_v32 }
 0x8b0   : > { %3874 = vmatpush3.bf16.msra.mxu1 %v2751_v32 }
 0x8b1   : > { %3875 = vmatprep.subr.bf16.mxu1 %v2750_v54 }
 0x8b4   : > { %3876 = vmatpush3.bf16.msra.mxu1 %v2750_v54 }
 0x8b5   : > { %3877 = vmatprep.subr.bf16.mxu1 %v2749_v36 }
 0x8b8   : > { %3878 = vmatpush3.bf16.msra.mxu1 %v2749_v36 }
 0x907   : > { %v2210_v57 = vpop.xlane.xlu1 %2209 }
 0x908   : > { %v2232_v46 = vsub.f32 %v4829_v23, %v2210_v57 }
 0x90a   : > { %v2240_v37 = vmul.f32 1.442695, %v2232_v46 }
 0x90b   : > { %v2216_v61 = vpop.xlane.xlu1 %2215  ;;  %v2213_v51 = vpop.xlane.xlu0 %2212 }
 0x90c   : > { %4063 = vpow2.f32 %v2240_v37  ;;  %v2234_v62 = vsub.f32 %v4827_v40, %v2216_v61  ;;  %v2233_v38 = vsub.f32 %v4835_v14, %v2213_v51 }
 0x90e   : > { %v2244_v12 = vmul.f32 1.442695, %v2234_v62  ;;  %v2242_v52 = vmul.f32 1.442695, %v2233_v38 }
 0x90f   : > { %v2219_v16 = vpop.xlane.xlu0 %2218  ;;  %v2222_v49 = vpop.xlane.xlu1 %2221 }
 0x910   : > { %4065 = vpow2.f32 %v2244_v12  ;;  %v2235_v19 = vsub.f32 %v4833_v13, %v2219_v16  ;;  %v2236_v17 = vsub.f32 %v4843_v39, %v2222_v49 }
 0x911   : > { %4067 = vpow2.f32 %v2242_v52 }
 0x912   : > { %v2246_v43 = vmul.f32 1.442695, %v2235_v19  ;;  %v2248_v23 = vmul.f32 1.442695, %v2236_v17  ;;  %v3367_v17 = vld [vmem:[%s5093_s9 + $0x8] sm:$0xf] }
 0x913   : > { %v2228_v44 = vpop.xlane.xlu1 %2227  ;;  %v2225_v11 = vpop.xlane.xlu0 %2224  ;;  %3911 = vmatprep.subr.msk.bf16.mxu0 %vm1688_vm3, %v3367_v17 }
 0x914   : > { %4069 = vpow2.f32 %v2246_v43  ;;  %v2238_v21 = vsub.f32 %v4841_v4, %v2228_v44  ;;  %v2237_v40 = vsub.f32 %v4851_v47, %v2225_v11  ;;  %v2396_v43 = vsel %vm1688_vm3, %v3367_v17, 0 }
 0x915   : > { %4071 = vpow2.f32 %v2248_v23  ;;  %v3981_v23 = vld [vmem:[%s5089_s5 + $0x38] sm:$0xff]  }
 0x916   : > { %v2252_v14 = vmul.f32 1.442695, %v2238_v21  ;;  %v2250_v22 = vmul.f32 1.442695, %v2237_v40 }
 0x917   : > { %v2231_v32 = vpop.xlane.xlu0 %2230 }
 0x918   : > { %4073 = vpow2.f32 %v2252_v14  ;;  %v2239_v35 = vsub.f32 %v4849_v42, %v2231_v32 }
 0x919   : > { %v4064_v13 = vpop.eup %4063  ;;  %4075 = vpow2.f32 %v2250_v22 }
 0x91a   : > { %v2254_v39 = vmul.f32 1.442695, %v2239_v35  ;;  %v2256_v54 = vsel %vm955_vm2, %v4064_v13, 0.0 }
 0x91b   : > { %2257 = vadd.xlane.f32.xlu1 %v2256_v54 }
 0x91c   : > { %4077 = vpow2.f32 %v2254_v39 }
 0x91d   : > { %v4066_v56 = vpop.eup %4065 }
 0x91e   : > { %v4068_v15 = vpop.eup %4067  ;;  %v2262_v4 = vsel %vm955_vm2, %v4066_v56, 0.0 }
 0x91f   : > { %2263 = vadd.xlane.f32.xlu1 %v2262_v4  ;;  %v2259_v47 = vsel %vm955_vm2, %v4068_v15, 0.0  ;;  %v2280_v36 = vpack.c.bf16 %v4068_v15, %v4064_v13 }
 0x920   : > { %2260 = vadd.xlane.f32.xlu0 %v2259_v47 }
 0x921   : > { %v4070_v57 = vpop.eup %4069  ;;  %3801 = vmatprep.mubr.msk.bf16.mxu0 %vm955_vm2, %v2280_v36 }
 0x922   : > { %v4072_v42 = vpop.eup %4071  ;;  %v2281_v46 = vpack.c.bf16 %v4070_v57, %v4066_v56  ;;  %v2265_v37 = vsel %vm955_vm2, %v4070_v57, 0.0 }
 0x923   : > { %v2268_v61 = vsel %vm955_vm2, %v4072_v42, 0.0 }
 0x924   : > { %2269 = vadd.xlane.f32.xlu1 %v2268_v61  ;;  %2266 = vadd.xlane.f32.xlu0 %v2265_v37 }
 0x925   : > { %v4074_v51 = vpop.eup %4073  ;;  %3802 = vmatmul.mubr.msk.bf16.vlgmr.msra.gmra.mxu0 %vm955_vm2, %v2281_v46 }
 0x926   : > { %v4076_v62 = vpop.eup %4075  ;;  %v2274_v38 = vsel %vm955_vm2, %v4074_v51, 0.0  ;;  %3810 = vmatpush3.bf16.msra.mxu0 %v2396_v43 }
 0x927   : > { %v2271_v12 = vsel %vm955_vm2, %v4076_v62, 0.0  ;;  %v2282_v52 = vpack.c.bf16 %v4076_v62, %v4072_v42  ;;  %3831 = vmatprep.subr.bf16.mxu0 %v3981_v23 }
 0x928   : > { %2275 = vadd.xlane.f32.xlu1 %v2274_v38  ;;  %2272 = vadd.xlane.f32.xlu0 %v2271_v12  ;;  %v3982_v12 = vld [vmem:[%s5089_s5 + $0x30] sm:$0xff]  }
 0x929   : > { %v4078_v16 = vpop.eup %4077  ;;  %3805 = vmatprep.mubr.msk.bf16.mxu0 %vm955_vm2, %v2282_v52 }
 0x92a   : > { %v2277_v49 = vsel %vm955_vm2, %v4078_v16, 0.0  ;;  %v2283_v19 = vpack.c.bf16 %v4078_v16, %v4074_v51 }
 0x92c   : > { %2278 = vadd.xlane.f32.xlu0 %v2277_v49 }
 0x92d   : > { %3806 = vmatmul.mubr.msk.bf16.gmra.mxu0 %vm955_vm2, %v2283_v19 }
 0x9a4   : > { %v2258_v11 = vpop.xlane.xlu1 %2257 }
 0x9a5   : > { %4079 = vrcp.f32 %v2258_v11 }
 0x9a8   : > { %v2264_v40 = vpop.xlane.xlu1 %2263 }
 0x9a9   : > { %v2261_v44 = vpop.xlane.xlu0 %2260 }
 0x9ad   : > { %v2267_v21 = vpop.xlane.xlu0 %2266  ;;  %v2270_v22 = vpop.xlane.xlu1 %2269 }
 0x9ae   : > { %4081 = vrcp.f32 %v2267_v21 }
 0x9af   : > { %4083 = vrcp.f32 %v2261_v44 }
 0x9b0   : > { %4085 = vrcp.f32 %v2264_v40 }
 0x9b1   : > { %v2273_v14 = vpop.xlane.xlu0 %2272  ;;  %4087 = vrcp.f32 %v2270_v22  ;;  %v2276_v35 = vpop.xlane.xlu1 %2275 }
 0x9b2   : > { %v4080_v54 = vpop.eup %4079 }
 0x9b5   : > { %v2279_v32 = vpop.xlane.xlu0 %2278 }
 0x9b6   : > { %4089 = vrcp.f32 %v2279_v32 }
 0x9b7   : > { %4091 = vrcp.f32 %v2273_v14 }
 0x9b8   : > { %4093 = vrcp.f32 %v2276_v35 }
 0x9bb   : > { %v4082_v15 = vpop.eup %4081 }
 0x9bc   : > { %v4084_v4 = vpop.eup %4083 }
 0x9bd   : > { %v4086_v57 = vpop.eup %4085 }
 0x9be   : > { %v4088_v52 = vpop.eup %4087 }
 0x9c3   : > { %v4090_v49 = vpop.eup %4089 }
 0x9c4   : > { %v4092_v19 = vpop.eup %4091 }
 0x9c5   : > { %v4094_v44 = vpop.eup %4093 }
 0x9e5   : > { %v3803_v13 = vpop.f32.mrf.mxu0 }
 0x9e6   : > { %v2371_v37 = vmul.f32 %v4086_v57, %v3803_v13 }
 0x9e7   : > { %v2330_v39 = vpop.f32.mrf.mxu0 }
 0x9e8   : > { %v2369_v42 = vmul.f32 %v4080_v54, %v2330_v39 }
 0x9e9   : > { %v3804_v56 = vpop.f32.mrf.mxu0 }
 0x9ea   : > { %v2372_v47 = vmul.f32 %v4082_v15, %v3804_v56 }
 0x9eb   : > { %v2333_v36 = vpop.f32.mrf.mxu0 }
 0x9ec   : > { %v2370_v46 = vmul.f32 %v4084_v4, %v2333_v36  ;;  %v2378_v62 = vpack.c.bf16 %v2372_v47, %v2371_v37 }
 0x9ed   : > { %v3807_v61 = vpop.f32.mrf.mxu0 }
 0x9ee   : > { %v2377_v51 = vpack.c.bf16 %v2370_v46, %v2369_v42  ;;  %v2375_v40 = vmul.f32 %v4094_v44, %v3807_v61 }
 0x9ef   : > { %v2346_v38 = vpop.f32.mrf.mxu0 }
 0x9f0   : > { %3811 = vmatprep.mubr.msk.bf16.mxu0 %vm865_vm1, %v2377_v51  ;;  %v2373_v11 = vmul.f32 %v4088_v52, %v2346_v38 }
 0x9f1   : > { %v3808_v16 = vpop.f32.mrf.mxu0  ;;  %3812 = vmatmul.mubr.msk.bf16.vlgmr.msra.gmra.mxu0 %vm865_vm1, %v2378_v62 }
 0x9f2   : > { %3832 = vmatpush3.bf16.msra.mxu0 %v3981_v23  ;;  %v2376_v17 = vmul.f32 %v4090_v49, %v3808_v16  ;;  %v1815_v23 = vadd.f32 %v4722_v20, %v4776_v63  ;;  %v1831_v20 = vadd.f32 %v4737_v18, %v4784_v3 }
 0x9f3   : > { %v2349_v43 = vpop.f32.mrf.mxu0  ;;  %3833 = vmatprep.subr.bf16.mxu0 %v3982_v12 }
 0x9f4   : > { %v2374_v21 = vmul.f32 %v4092_v19, %v2349_v43  ;;  %v2380_v22 = vpack.c.bf16 %v2376_v17, %v2375_v40 }
 0x9f6   : > { %v2379_v14 = vpack.c.bf16 %v2374_v21, %v2373_v11  ;;  %3834 = vmatpush3.bf16.msra.mxu0 %v3982_v12 }
 0x9f8   : > { %3815 = vmatprep.mubr.msk.bf16.mxu0 %vm865_vm1, %v2379_v14 }
 0x9f9   : > { %3816 = vmatmul.mubr.msk.bf16.gmra.mxu0 %vm865_vm1, %v2380_v22 }
 0x9fa   : > { %3835 = vmatprep.mubr.msk.bf16.mxu0 %vm422_vm0, %v4395_v26  ;;  %v1807_v26 = vadd.f32 %v4727_v50, %v4778_v0  ;;  %v1823_v0 = vadd.f32 %v4739_v28, %v4786_v5 }
 0xa01   : > { %3836 = vmatmul.mubr.msk.bf16.vlgmr.msra.gmra.mxu0 %vm422_vm0, %v4407_v53 }
 0xa02   : > { %3839 = vmatprep.mubr.msk.bf16.mxu0 %vm422_vm0, %v4423_v10  ;;  %v1818_v10 = vadd.f32 %v4729_v27, %v4780_v1  ;;  %v1834_v1 = vadd.f32 %v4741_v29, %v4788_v6  ;;  %v3389_v29 = vld [vmem:[%s5090_s6 + $0x3] ss:$0 sm:$0xff] }
 0xa09   : > { %3840 = vmatmul.mubr.msk.bf16.gmra.mxu0 %vm422_vm0, %v4435_v8 }
 0xa0a   : > { %3863 = vmatprep.mubr.msk.bf16.mxu0 %vm865_vm1, %v2561_v58 }
 0xab1   : > { %v3813_v32 = vpop.f32.mrf.mxu0 }
 0xab2   : > { %v4940_v35 = vadd.f32 %v3813_v32, %v1815_v23 }
 0xab3   : > { %v2432_v53 = vpop.f32.mrf.mxu0 }
 0xab4   : > { %v4944_v13 = vadd.f32 %v2432_v53, %v1807_v26 }
 0xab5   : > { %v3814_v8 = vpop.f32.mrf.mxu0 }
 0xab6   : > { %v4948_v25 = vadd.f32 %v3814_v8, %v1818_v10 }
 0xab7   : > { %v2435_v58 = vpop.f32.mrf.mxu0 }
 0xab8   : > { %v4952_v63 = vadd.f32 %v2435_v58, %v1810_v55 }
 0xab9   : > { %v3817_v50 = vpop.f32.mrf.mxu0 }
 0xaba   : > { %v4956_v39 = vadd.f32 %v3817_v50, %v1831_v20 }
 0xabb   : > { %v2448_v27 = vpop.f32.mrf.mxu0 }
 0xabc   : > { %v4960_v54 = vadd.f32 %v2448_v27, %v1823_v0 }
 0xabd   : > { %v3818_v7 = vpop.f32.mrf.mxu0 }
 0xabe   : > { %v4964_v56 = vadd.f32 %v3818_v7, %v1834_v1 }
 0xabf   : > { %v2451_v18 = vpop.f32.mrf.mxu0 }
 0xac0   : > { %v4966_v3 = vadd.f32 %v2451_v18, %v1826_v2 }
 0xac1   : > { %v3837_v15 = vpop.f32.mrf.mxu0 }
 0xac2   : > { %v2633_v38 = vadd.f32 %v3837_v15, %v3389_v29 }
 0xac3   : > { %v2624_v4 = vpop.f32.mrf.mxu0 }
 0xac4   : > { %v2625_v49 = vadd.f32 %v3389_v29, %v2624_v4 }
 0xac5   : > { %v3838_v28 = vpop.f32.mrf.mxu0 }
 0xac6   : > { %v2636_v62 = vadd.f32 %v3838_v28, %v3389_v29 }
 0xac7   : > { %v2627_v5 = vpop.f32.mrf.mxu0 }
 0xac8   : > { %v2656_v12 = vpack.c.bf16 %v2636_v62, %v2633_v38  ;;  %v2628_v16 = vadd.f32 %v3389_v29, %v2627_v5 }
 0xac9   : > { %v3841_v47 = vpop.f32.mrf.mxu0 }
 0xaca   : > { %v2649_v57 = vadd.f32 %v3841_v47, %v3389_v29  ;;  %v2655_v19 = vpack.c.bf16 %v2628_v16, %v2625_v49  ;;  %v2769_v17 = vsel %vm865_vm1, %v2656_v12, 0 }
 0xacb   : > { %v2640_v36 = vpop.f32.mrf.mxu0 }
 0xacc   : > { %v2641_v33 = vadd.f32 %v3389_v29, %v2640_v36  ;;  %v2766_v43 = vsel %vm865_vm1, %v2655_v19, 0 }
 0xacd   : > { %v3842_v6 = vpop.f32.mrf.mxu0 }
 0xace   : > { %v2652_v42 = vadd.f32 %v3842_v6, %v3389_v29 }
 0xacf   : > { %v2643_v46 = vpop.f32.mrf.mxu0 }
 0xad0   : > { %v2658_v9 = vpack.c.bf16 %v2652_v42, %v2649_v57  ;;  %v2644_v37 = vadd.f32 %v3389_v29, %v2643_v46 }
 0xad2   : > { %v2657_v61 = vpack.c.bf16 %v2644_v37, %v2641_v33  ;;  %3912 = vmatprep.subr.msk.bf16.mxu0 %vm865_vm1, %v2658_v9  ;;  %v2775_v51 = vsel %vm865_vm1, %v2658_v9, 0 }
 0xad3   : > { %3856 = vmatpush3.bf16.xpose.msra.mxu0 %v2775_v51 }
 0xad4   : > { %3913 = vmatprep.subr.msk.bf16.mxu0 %vm865_vm1, %v2657_v61  ;;  %v2772_v52 = vsel %vm865_vm1, %v2657_v61, 0 }
 0xadb   : > { %3858 = vmatpush3.bf16.xpose.msra.mxu0 %v2772_v52 }
 0xadc   : > { %3914 = vmatprep.subr.msk.bf16.mxu0 %vm865_vm1, %v2656_v12 }
 0xae3   : > { %3860 = vmatpush3.bf16.xpose.msra.mxu0 %v2769_v17 }
 0xae4   : > { %3915 = vmatprep.subr.msk.bf16.mxu0 %vm865_vm1, %v2655_v19 }
 0xaeb   : > { %3862 = vmatpush3.bf16.xpose.msra.mxu0 %v2766_v43 }
 0xaf2   : > { %3864 = vmatmul.mubr.msk.bf16.vlgmr.msra.gmra.mxu0 %vm865_vm1, %v2562_v31 }
 0xaf3   : > { %3867 = vmatprep.mubr.msk.bf16.mxu0 %vm865_vm1, %v2563_v48 }
 0xafa   : > { %3868 = vmatmul.mubr.msk.bf16.gmra.mxu0 %vm865_vm1, %v2564_v41 }
 0xbb2   : > { %v3865_v44 = vpop.f32.mrf.mxu0 }
 0xbb3   : > { %v2848_v34 = vsel %vm955_vm2, %v3865_v44, -inf }
 0xbb4   : > { %v2811_v11 = vpop.f32.mrf.mxu0 }
 0xbb5   : > { %v2842_v21 = vsel %vm955_vm2, %v2811_v11, -inf }
 0xbb6   : > { %2843 = vmax.xlane.f32.xlu1 %v2842_v21  ;;  %v3866_v40 = vpop.f32.mrf.mxu0 }
 0xbb7   : > { %v2851_v45 = vsel %vm955_vm2, %v3866_v40, -inf }
 0xbb8   : > { %v2814_v14 = vpop.f32.mrf.mxu0 }
 0xbb9   : > { %v2845_v24 = vsel %vm955_vm2, %v2814_v14, -inf }
 0xbba   : > { %2849 = vmax.xlane.f32.xlu1 %v2848_v34  ;;  %2846 = vmax.xlane.f32.xlu0 %v2845_v24  ;;  %v3869_v31 = vpop.f32.mrf.mxu0 }
 0xbbb   : > { %v2860_v48 = vsel %vm955_vm2, %v3869_v31, -inf }
 0xbbc   : > { %v2827_v59 = vpop.f32.mrf.mxu0 }
 0xbbd   : > { %v2854_v60 = vsel %vm955_vm2, %v2827_v59, -inf }
 0xbbe   : > { %2852 = vmax.xlane.f32.xlu0 %v2851_v45  ;;  %2855 = vmax.xlane.f32.xlu1 %v2854_v60  ;;  %v3870_v30 = vpop.f32.mrf.mxu0 }
 0xbbf   : > { %v2863_v23 = vsel %vm955_vm2, %v3870_v30, -inf }
 0xbc0   : > { %v2830_v41 = vpop.f32.mrf.mxu0 }
 0xbc1   : > { %v2857_v22 = vsel %vm955_vm2, %v2830_v41, -inf }
 0xbc2   : > { %2861 = vmax.xlane.f32.xlu1 %v2860_v48  ;;  %2858 = vmax.xlane.f32.xlu0 %v2857_v22 }
 0xbc6   : > { %2864 = vmax.xlane.f32.xlu0 %v2863_v23 }
 0xc3f   : > { %v2844_v32 = vpop.xlane.xlu1 %2843 }
 0xc40   : > { %v2866_v26 = vsub.f32 %v2811_v11, %v2844_v32 }
 0xc42   : > { %v2874_v53 = vmul.f32 1.442695, %v2866_v26 }
 0xc43   : > { %v2850_v10 = vpop.xlane.xlu1 %2849  ;;  %v2847_v8 = vpop.xlane.xlu0 %2846 }
 0xc44   : > { %4095 = vpow2.f32 %v2874_v53  ;;  %v2868_v55 = vsub.f32 %v3865_v44, %v2850_v10  ;;  %v2867_v58 = vsub.f32 %v2814_v14, %v2847_v8  ;;  %v3416_v14 = vld [vmem:[%s5093_s9 + $0xc] sm:$0xf] }
 0xc45   : > { %3916 = vmatprep.subr.msk.bf16.mxu1 %vm1688_vm3, %v3416_v14  ;;  %v3030_v34 = vsel %vm1688_vm3, %v3416_v14, 0 }
 0xc46   : > { %v2878_v20 = vmul.f32 1.442695, %v2868_v55  ;;  %v2876_v50 = vmul.f32 1.442695, %v2867_v58 }
 0xc47   : > { %v2853_v0 = vpop.xlane.xlu0 %2852  ;;  %v2856_v27 = vpop.xlane.xlu1 %2855 }
 0xc48   : > { %4097 = vpow2.f32 %v2878_v20  ;;  %v2869_v1 = vsub.f32 %v3866_v40, %v2853_v0  ;;  %v2870_v7 = vsub.f32 %v2827_v59, %v2856_v27 }
 0xc49   : > { %4099 = vpow2.f32 %v2876_v50 }
 0xc4a   : > { %v2880_v2 = vmul.f32 1.442695, %v2869_v1  ;;  %v2882_v18 = vmul.f32 1.442695, %v2870_v7 }
 0xc4b   : > { %v2862_v15 = vpop.xlane.xlu1 %2861  ;;  %v2859_v4 = vpop.xlane.xlu0 %2858 }
 0xc4c   : > { %4101 = vpow2.f32 %v2880_v2  ;;  %v2872_v28 = vsub.f32 %v3869_v31, %v2862_v15  ;;  %v2871_v5 = vsub.f32 %v2830_v41, %v2859_v4 }
 0xc4d   : > { %4103 = vpow2.f32 %v2882_v18 }
 0xc4e   : > { %v2886_v47 = vmul.f32 1.442695, %v2872_v28  ;;  %v2884_v36 = vmul.f32 1.442695, %v2871_v5 }
 0xc4f   : > { %v2865_v29 = vpop.xlane.xlu0 %2864 }
 0xc50   : > { %4105 = vpow2.f32 %v2886_v47  ;;  %v2873_v6 = vsub.f32 %v3870_v30, %v2865_v29 }
 0xc51   : > { %v4096_v57 = vpop.eup %4095  ;;  %4107 = vpow2.f32 %v2884_v36 }
 0xc52   : > { %v2888_v42 = vmul.f32 1.442695, %v2873_v6  ;;  %v2890_v46 = vsel %vm955_vm2, %v4096_v57, 0.0 }
 0xc53   : > { %2891 = vadd.xlane.f32.xlu1 %v2890_v46 }
 0xc54   : > { %4109 = vpow2.f32 %v2888_v42 }
 0xc55   : > { %v4098_v33 = vpop.eup %4097 }
 0xc56   : > { %v4100_v9 = vpop.eup %4099  ;;  %v2896_v37 = vsel %vm955_vm2, %v4098_v33, 0.0 }
 0xc57   : > { %2897 = vadd.xlane.f32.xlu1 %v2896_v37  ;;  %v2893_v61 = vsel %vm955_vm2, %v4100_v9, 0.0  ;;  %v2914_v51 = vpack.c.bf16 %v4100_v9, %v4096_v57 }
 0xc58   : > { %2894 = vadd.xlane.f32.xlu0 %v2893_v61  ;;  %v3421_v61 = vld [vmem:[%s5094_s10] ss:$0 sm:$0xff] }
 0xc59   : > { %v4102_v62 = vpop.eup %4101  ;;  %3879 = vmatprep.mubr.msk.bf16.mxu1 %vm955_vm2, %v2914_v51 }
 0xc5a   : > { %v4104_v38 = vpop.eup %4103  ;;  %v2915_v12 = vpack.c.bf16 %v4102_v62, %v4098_v33  ;;  %v2899_v52 = vsel %vm955_vm2, %v4102_v62, 0.0 }
 0xc5b   : > { %v2902_v16 = vsel %vm955_vm2, %v4104_v38, 0.0 }
 0xc5c   : > { %2903 = vadd.xlane.f32.xlu1 %v2902_v16  ;;  %2900 = vadd.xlane.f32.xlu0 %v2899_v52 }
 0xc5d   : > { %v4106_v49 = vpop.eup %4105  ;;  %3880 = vmatmul.mubr.msk.bf16.vlgmr.msra.gmra.mxu1 %vm955_vm2, %v2915_v12 }
 0xc5e   : > { %v4108_v19 = vpop.eup %4107  ;;  %v2908_v17 = vsel %vm955_vm2, %v4106_v49, 0.0  ;;  %3888 = vmatpush3.bf16.msra.mxu1 %v3030_v34 }
 0xc5f   : > { %v2905_v43 = vsel %vm955_vm2, %v4108_v19, 0.0  ;;  %v2916_v44 = vpack.c.bf16 %v4108_v19, %v4104_v38 }
 0xc60   : > { %2909 = vadd.xlane.f32.xlu1 %v2908_v17  ;;  %2906 = vadd.xlane.f32.xlu0 %v2905_v43 }
 0xc61   : > { %v4110_v11 = vpop.eup %4109  ;;  %3883 = vmatprep.mubr.msk.bf16.mxu1 %vm955_vm2, %v2916_v44 }
 0xc62   : > { %v2911_v21 = vsel %vm955_vm2, %v4110_v11, 0.0  ;;  %v2917_v40 = vpack.c.bf16 %v4110_v11, %v4106_v49 }
 0xc64   : > { %2912 = vadd.xlane.f32.xlu0 %v2911_v21 }
 0xc65   : > { %3884 = vmatmul.mubr.msk.bf16.gmra.mxu1 %vm955_vm2, %v2917_v40 }
 0xcdc   : > { %v2892_v31 = vpop.xlane.xlu1 %2891 }
 0xcdd   : > { %4111 = vrcp.f32 %v2892_v31 }
 0xce0   : > { %v2898_v45 = vpop.xlane.xlu1 %2897 }
 0xce1   : > { %v2895_v24 = vpop.xlane.xlu0 %2894 }
 0xce5   : > { %v2901_v59 = vpop.xlane.xlu0 %2900  ;;  %v2904_v30 = vpop.xlane.xlu1 %2903 }
 0xce6   : > { %4113 = vrcp.f32 %v2901_v59 }
 0xce7   : > { %4115 = vrcp.f32 %v2895_v24 }
 0xce8   : > { %4117 = vrcp.f32 %v2898_v45 }
 0xce9   : > { %v2907_v60 = vpop.xlane.xlu0 %2906  ;;  %4119 = vrcp.f32 %v2904_v30  ;;  %v2910_v48 = vpop.xlane.xlu1 %2909 }
 0xcea   : > { %v4112_v32 = vpop.eup %4111 }
 0xced   : > { %v2913_v41 = vpop.xlane.xlu0 %2912 }
 0xcee   : > { %4121 = vrcp.f32 %v2913_v41 }
 0xcef   : > { %4123 = vrcp.f32 %v2907_v60 }
 0xcf0   : > { %4125 = vrcp.f32 %v2910_v48 }
 0xcf3   : > { %v4114_v53 = vpop.eup %4113 }
 0xcf4   : > { %v4116_v10 = vpop.eup %4115 }
 0xcf5   : > { %v4118_v58 = vpop.eup %4117 }
 0xcf6   : > { %v4120_v18 = vpop.eup %4119 }
 0xcfb   : > { %v4122_v4 = vpop.eup %4121 }
 0xcfc   : > { %v4124_v28 = vpop.eup %4123 }
 0xcfd   : > { %v4126_v36 = vpop.eup %4125 }
 0xd1d   : > { %v3881_v22 = vpop.f32.mrf.mxu1 }
 0xd1e   : > { %v3005_v0 = vmul.f32 %v4118_v58, %v3881_v22 }
 0xd1f   : > { %v2964_v23 = vpop.f32.mrf.mxu1 }
 0xd20   : > { %v3003_v20 = vmul.f32 %v4112_v32, %v2964_v23 }
 0xd21   : > { %v3882_v26 = vpop.f32.mrf.mxu1 }
 0xd22   : > { %v3006_v8 = vmul.f32 %v4114_v53, %v3882_v26 }
 0xd23   : > { %v2967_v55 = vpop.f32.mrf.mxu1 }
 0xd24   : > { %v3004_v50 = vmul.f32 %v4116_v10, %v2967_v55  ;;  %v3012_v7 = vpack.c.bf16 %v3006_v8, %v3005_v0 }
 0xd25   : > { %v3885_v27 = vpop.f32.mrf.mxu1 }
 0xd26   : > { %v3011_v1 = vpack.c.bf16 %v3004_v50, %v3003_v20  ;;  %v3009_v57 = vmul.f32 %v4126_v36, %v3885_v27 }
 0xd27   : > { %v2980_v2 = vpop.f32.mrf.mxu1 }
 0xd28   : > { %3889 = vmatprep.mubr.msk.bf16.mxu1 %vm865_vm1, %v3011_v1  ;;  %v3007_v29 = vmul.f32 %v4120_v18, %v2980_v2 }
 0xd29   : > { %v3886_v15 = vpop.f32.mrf.mxu1  ;;  %3890 = vmatmul.mubr.msk.bf16.vlgmr.msra.gmra.mxu1 %vm865_vm1, %v3012_v7 }
 0xd2a   : > { %v3010_v5 = vmul.f32 %v4122_v4, %v3886_v15 }
 0xd2b   : > { %v2983_v47 = vpop.f32.mrf.mxu1 }
 0xd2c   : > { %v3008_v6 = vmul.f32 %v4124_v28, %v2983_v47  ;;  %v3014_v46 = vpack.c.bf16 %v3010_v5, %v3009_v57 }
 0xd2e   : > { %v3013_v42 = vpack.c.bf16 %v3008_v6, %v3007_v29 }
 0xd30   : > { %3893 = vmatprep.mubr.msk.bf16.mxu1 %vm865_vm1, %v3013_v42 }
 0xd31   : > { %3894 = vmatmul.mubr.msk.bf16.gmra.mxu1 %vm865_vm1, %v3014_v46 }
 0xde9   : > { %v3891_v33 = vpop.f32.mrf.mxu1 }
 0xdea   : > { %v3099_v16 = vadd.f32 %v3891_v33, %v4940_v35 }
 0xdeb   : > { %v3066_v9 = vpop.f32.mrf.mxu1 }
 0xdec   : > { %v3097_v37 = vadd.f32 %v3066_v9, %v4944_v13  ;;  %v3114_v17 = vadd.f32 %v3421_v61, %v3099_v16 }
 0xded   : > { %v3892_v51 = vpop.f32.mrf.mxu1 }
 0xdee   : > { %v3112_v62 = vadd.f32 %v3421_v61, %v3097_v37  ;;  %v3100_v43 = vadd.f32 %v3892_v51, %v4948_v25 }
 0xdef   : > { %v3069_v38 = vpop.f32.mrf.mxu1 }
 0xdf0   : > { %v3098_v12 = vadd.f32 %v3069_v38, %v4952_v63  ;;  %3120 = vxpose.xlu1.b32.start [1/8] (short) (narrow) %v3112_v62, 32  ;;  %v3115_v44 = vadd.f32 %v3421_v61, %v3100_v43 }
 0xdf1   : > { %v3895_v52 = vpop.f32.mrf.mxu1 }
 0xdf2   : > { %v3113_v49 = vadd.f32 %v3421_v61, %v3098_v12  ;;  %v3103_v35 = vadd.f32 %v3895_v52, %v4956_v39 }
 0xdf3   : > { %v3082_v19 = vpop.f32.mrf.mxu1 }
 0xdf4   : > { %3121 = vxpose.xlu1.b32.cont [2/8] (short) (narrow) %v3113_v49, 32  ;;  %v3101_v11 = vadd.f32 %v3082_v19, %v4960_v54  ;;  %v3118_v34 = vadd.f32 %v3421_v61, %v3103_v35 }
 0xdf5   : > { %v3896_v13 = vpop.f32.mrf.mxu1 }
 0xdf6   : > { %v3116_v40 = vadd.f32 %v3421_v61, %v3101_v11  ;;  %v3104_v25 = vadd.f32 %v3896_v13, %v4964_v56 }
 0xdf7   : > { %v3085_v21 = vpop.f32.mrf.mxu1 }
 0xdf8   : > { %3122 = vxpose.xlu1.b32.cont [3/8] (short) (narrow) %v3114_v17, 32  ;;  %v3102_v63 = vadd.f32 %v3085_v21, %v4966_v3  ;;  %v3119_v24 = vadd.f32 %v3421_v61, %v3104_v25 }
 0xdfa   : > { %v3117_v14 = vadd.f32 %v3421_v61, %v3102_v63 }
 0xdfc   : > { %3123 = vxpose.xlu1.b32.cont [4/8] (short) (narrow) %v3115_v44, 32 }
 0xe00   : > { %3124 = vxpose.xlu1.b32.cont [5/8] (short) (narrow) %v3116_v40, 32 }
 0xe04   : > { %3125 = vxpose.xlu1.b32.cont [6/8] (short) (narrow) %v3117_v14, 32 }
 0xe08   : > { %3126 = vxpose.xlu1.b32.cont [7/8] (short) (narrow) %v3118_v34, 32 }
 0xe0c   : > { %3127 = vxpose.xlu1.b32.end [8/8] (short) (narrow) %v3119_v24, 32 }
 0xe6c   : > { %v3136_v54 = vpop.trf.xlu1 }
 0xe6d   : > { %3152 = vst.msk [vmem:[%s379_s13] sm:$0xff] %vm955_vm2, %v3136_v54 }
 0xe70   : > { %v3137_v3 = vpop.trf.xlu1 }
 0xe71   : > { %3153 = vst.msk [vmem:[%s379_s13 + $0x8] sm:$0xff] %vm955_vm2, %v3137_v3 }
 0xe74   : > { %v3138_v39 = vpop.trf.xlu1 }
 0xe75   : > { %3154 = vst.msk [vmem:[%s379_s13 + $0x10] sm:$0xff] %vm955_vm2, %v3138_v39 }
 0xe78   : > { %v3139_v56 = vpop.trf.xlu1 }
 0xe79   : > { %3155 = vst.msk [vmem:[%s379_s13 + $0x18] sm:$0xff] %vm955_vm2, %v3139_v56 }
 0xe7a   : > { %4140 = shalt.err (!%p4137_p3)
}
 0xe7b   : > { %s4141_s30 = scalar_lea.hbm %s5041_s24, 512  ;;  %s4145_s16 = scalar_lea.hbm %s5095_s11, 1024 }
 0xe7c   : > { %p4142_p4 = scmp.ne.s32.totalorder %s5041_s24, %s4141_s30  ;;  %p4146_p9 = scmp.lt.s32.totalorder %s5041_s24, %s5095_s11 }
 0xe7d   : > { %p4147_p10 = scmp.lt.s32.totalorder %s4145_s16, %s4141_s30 }
 0xe7e   : > { %p4143_p7 = pnand %p4142_p4, %p4290_p5 }
 0xe7f   : > { %p4148_p11 = por %p4147_p10, %p4146_p9 }
 0xe80   : > { %p4144_p8 = pneg %p4143_p7 }
 0xe82   : > { %p4149_p12 = pnand %p4148_p11, %p4144_p8 }
 0xe84   : > { %4152 = shalt.err (!%p4149_p12)
}
 0xe85   : > { %s4190_s0 = smov 128   ;;  %s4191_s29 = smov 8  }
 0xe86   : > { %3917 = dma.vmem_to_hbm [thread:$0]  (%p4290_p5), %s5036_s14, 512, %s5041_s24, %s5044_s25, %s4190_s0, %s4190_s0, %s4191_s29  }
 0xe87 PF: > { %p3923_p13 = scmp.ge.s32.totalorder %s4187_s20, 2  ;;  %s3185_s12 = sand.u32 1, %s4175_s17  }
 0xe88   : > { %s3186_s30 = scalar_lea.sflag [#allocation3], %s3185_s12 }
 0xe89   : > { %p3920_p0 = pnand %p3923_p13, %p4294_p6 }
 0xe8b   : > { %p3921_p1 = pneg %p3920_p0 }
 0xe8d   : > { %4170 = dma.done.wait (%p3921_p1), %s3186_s30, 512  }
 0xe8e   : > { %4172 = vsyncadd (%p3921_p1), %s3186_s30, 4294966784  ;;  %p21_p2 = scmp.ge.s32.totalorder %s4277_s23, 4   ;;  %s5100_s17 = smov %s4179_s18 }
 0xe8f   : > { %s5101_s18 = smov %s4183_s19  ;;  %s5102_s19 = smov %s4288_s26 }
 0xe90   : > { %s5103_s20 = smov %s4277_s23  ;;  %23 = sbr.rel (!%p21_p2) target bundleno = 5 (0x5), region = 120 }
 0xe95   :  { %3191 = vsyncpa [#allocation3], 1 }
 0xe96   :  { %3193 = vsyncpa [#allocation3 + $0x1], 1 }

</bundles_post_ra>
